<compile_context>
chip_gen: v7x
topology: tpu7x:2x2x1
jax: 0.10.0
libtpu: 0.0.40
codegen_flags: <defaults>
</compile_context>

<pallas_src>
import functools

import numpy as np

import jax
import jax.numpy as jnp
from jax import lax
from jax.experimental import pallas as pl
from jax.experimental.pallas import tpu as pltpu

EPS = 1e-5  # nn.BatchNorm2d default eps

# Matmul-operand dtype.  bf16 is MXU-native on v5e/v6e/v7x and halves the im2col
# buffer, but at C=4 this kernel is layout/overhead bound (not MXU bound), so f32
# is kept as the default to preserve the tight 1e-4 validation against the f32
# PyTorch-equivalent reference.  Flip to jnp.bfloat16 for production shapes
# (the accumulator, BN statistics and residual path stay f32 either way).
MATMUL_DTYPE = jnp.float32


def _residual_block_kernel(x_ref, w_ref, bn_ref, msk_ref, o_ref, *, W):
    """Fully fused ResidualBlock forward.

    x_ref/o_ref: (N, C, H*W) float32   (channels-first, flattened spatial)
    w_ref:       (2*Cout, 9*Cin)       [conv1 ; conv2], transposed im2col weights
    bn_ref:      (4*C, 1)  float32     [gamma1; beta1; gamma2; beta2]
    msk_ref:     (4, N*H*W) float32    [h==0; h==H-1; w==0; w==W-1] boundary masks
    """
    N, C, S = x_ref.shape
    M = N * S
    inv_m = 1.0 / M

    # Lane-dense load; (N, C, S) -> (C, N*S) via an aligned lane concat.
    x = jnp.concatenate([x_ref[n] for n in range(N)], axis=-1)      # (C, M) f32

    # Boundary masks over the flattened (n, h, w) lane axis.
    h_first = msk_ref[0:1, :] > 0.0
    h_last = msk_ref[1:2, :] > 0.0
    w_first = msk_ref[2:3, :] > 0.0
    w_last = msk_ref[3:4, :] > 0.0

    def taps(t):
        """Reflect-padded 3x3 im2col in the flat layout: (C, M) -> (9*C, M).

        Row order is (kh, kw) outer, input-channel inner, matching the
        (3, 3, Cin, Cout) -> (9*Cin, Cout) weight reshape.
        """
        up = jnp.roll(t, W, axis=1)      # value from row h-1
        down = jnp.roll(t, -W, axis=1)   # value from row h+1
        rows = []
        for dh in (-1, 0, 1):
            if dh == -1:                 # reflect: row -1 -> row 1
                yh = jnp.where(h_first, down, up)
            elif dh == 1:                # reflect: row H -> row H-2
                yh = jnp.where(h_last, up, down)
            else:
                yh = t
            left = jnp.roll(yh, 1, axis=1)    # value from col w-1
            right = jnp.roll(yh, -1, axis=1)  # value from col w+1
            rows.append(jnp.where(w_first, right, left))   # dw = -1
            rows.append(yh)                                 # dw =  0
            rows.append(jnp.where(w_last, left, right))     # dw = +1
        return jnp.concatenate(rows, axis=0)                # (9*C, M)

    def conv_bn(t, w, gamma, beta):
        """conv3x3(reflect-pad) + batch-stat BatchNorm, (C, M) -> (Cout, M)."""
        patches = taps(t).astype(MATMUL_DTYPE)
        acc = jnp.dot(w, patches, preferred_element_type=jnp.float32)   # (Cout, M)
        # One-pass f32 per-channel statistics (conv bias omitted on purpose:
        # it is exactly cancelled by the mean subtraction below).
        s = jnp.sum(acc, axis=1, keepdims=True)
        ss = jnp.sum(acc * acc, axis=1, keepdims=True)
        mean = s * inv_m
        var = jnp.maximum(ss * inv_m - mean * mean, 0.0)
        scale = gamma * lax.rsqrt(var + EPS)                 # (Cout, 1)
        shift = beta - mean * scale
        return acc * scale + shift                           # single FMA apply

    w1 = w_ref[0:C, :].astype(MATMUL_DTYPE)                  # (Cout, 9*Cin)
    w2 = w_ref[C:2 * C, :].astype(MATMUL_DTYPE)
    g1, be1 = bn_ref[0:C], bn_ref[C:2 * C]                   # (C, 1) each
    g2, be2 = bn_ref[2 * C:3 * C], bn_ref[3 * C:4 * C]

    # conv_block1: conv -> BN -> ReLU
    h = jnp.maximum(conv_bn(x, w1, g1, be1), 0.0)
    # conv_block2: conv -> BN -> + residual (no final ReLU)
    y = conv_bn(h, w2, g2, be2) + x

    # Lane-dense output stores (aligned 256-lane slices of the (C, M) result).
    for n in range(N):
        o_ref[n] = y[:, n * S:(n + 1) * S]


def residual_block(x_nchw, params):
    """ResidualBlock.forward: NCHW in, NCHW out (PyTorch convention).

    Conv weights in `params` are HWIO (kh, kw, Cin, Cout), i.e.
    torch_weight.permute(2, 3, 1, 0).  Conv biases (if present) are ignored by
    the kernel: with batch-statistics BatchNorm they cancel exactly.
    """
    N, C, H, W = x_nchw.shape
    S = H * W
    M = N * S
    cout = params["w1"].shape[-1]
    assert cout == C, "residual add requires in_channels == out_channels"
    assert params["w1"].shape == (3, 3, C, C) and params["w2"].shape == (3, 3, C, C)

    x = x_nchw.reshape(N, C, S).astype(jnp.float32)          # free layout reshape

    # HWIO (3,3,Cin,Cout) -> transposed im2col form (Cout, 9*Cin); both convs
    # stacked into a single (2*Cout, 9*Cin) ref.
    w1t = params["w1"].reshape(9 * C, C).T
    w2t = params["w2"].reshape(9 * C, C).T
    w_stack = jnp.concatenate([w1t, w2t], axis=0).astype(MATMUL_DTYPE)

    # BN affine params packed as (4*C, 1): [gamma1; beta1; gamma2; beta2].
    bn_stack = jnp.concatenate(
        [params["g1"], params["be1"], params["g2"], params["be2"]]
    ).reshape(4 * C, 1).astype(jnp.float32)

    # Reflect-boundary masks over the flattened (n, h, w) lane axis
    # (compile-time constants, built with numpy).
    lane = np.arange(M)
    hh = (lane % S) // W
    ww = lane % W
    masks = jnp.asarray(
        np.stack([hh == 0, hh == H - 1, ww == 0, ww == W - 1]).astype(np.float32))

    vmem = pl.BlockSpec(memory_space=pltpu.MemorySpace.VMEM)
    out = pl.pallas_call(
        functools.partial(_residual_block_kernel, W=W),
        out_shape=jax.ShapeDtypeStruct((N, C, S), jnp.float32),
        in_specs=[vmem, vmem, vmem, vmem],
        out_specs=vmem,
        # Sized from the actual live set (<1 MiB) + headroom; well under the
        # scoped default on every generation (16 MiB v5e, 32 MiB v6e/v7x).
        compiler_params=pltpu.CompilerParams(vmem_limit_bytes=4 * 1024 * 1024),
    )(x, w_stack, bn_stack, masks)
    return out.reshape(N, C, H, W)


# ---------------- pure-JAX reference (for correctness check) ----------------
def _ref_conv_block(x, w, b, gamma, beta, relu, residual=None):
    xpad = jnp.pad(x, ((0, 0), (1, 1), (1, 1), (0, 0)), mode="reflect")
    y = lax.conv_general_dilated(xpad, w, (1, 1), "VALID",
                                 dimension_numbers=("NHWC", "HWIO", "NHWC"))
    y = y + b                                   # conv bias kept in the reference
    mean = y.mean(axis=(0, 1, 2), keepdims=True)
    var = ((y - mean) ** 2).mean(axis=(0, 1, 2), keepdims=True)
    y = (y - mean) * lax.rsqrt(var + EPS) * gamma + beta
    if residual is not None:
        y = y + residual
    if relu:
        y = jnp.maximum(y, 0.0)
    return y


def _ref_residual_block(x_nchw, p):
    x = jnp.transpose(x_nchw, (0, 2, 3, 1)).astype(jnp.float32)
    h = _ref_conv_block(x, p["w1"], p["b1"], p["g1"], p["be1"], relu=True)
    y = _ref_conv_block(h, p["w2"], p["b2"], p["g2"], p["be2"], relu=False,
                        residual=x)
    return jnp.transpose(y, (0, 3, 1, 2))


if __name__ == "__main__":
    # ResidualBlock(in_channels=4, out_channels=4, kernel_sz=3, stride=1,
    #               instance_norm=False, final_relu=False)
    N, C, H, W = 2, 4, 16, 16
    K = 3

    key = jax.random.PRNGKey(0)
    kx, kw1, kb1, kw2, kb2, kg1, kbe1, kg2, kbe2 = jax.random.split(key, 9)

    x = jax.random.normal(kx, (N, C, H, W), jnp.float32)

    params = {
        # conv weights stored HWIO (kh, kw, Cin, Cout)
        "w1": 0.1 * jax.random.normal(kw1, (K, K, C, C), jnp.float32),
        "b1": 0.1 * jax.random.normal(kb1, (C,), jnp.float32),   # reference only
        "g1": 1.0 + 0.1 * jax.random.normal(kg1, (C,), jnp.float32),
        "be1": 0.1 * jax.random.normal(kbe1, (C,), jnp.float32),
        "w2": 0.1 * jax.random.normal(kw2, (K, K, C, C), jnp.float32),
        "b2": 0.1 * jax.random.normal(kb2, (C,), jnp.float32),   # reference only
        "g2": 1.0 + 0.1 * jax.random.normal(kg2, (C,), jnp.float32),
        "be2": 0.1 * jax.random.normal(kbe2, (C,), jnp.float32),
    }

    out = jax.block_until_ready(residual_block(x, params))
    ref = jax.block_until_ready(_ref_residual_block(x, params))

    assert out.shape == (N, C, H, W)
    tol = 1e-4 if MATMUL_DTYPE == jnp.float32 else 5e-2
    assert jnp.allclose(out, ref, atol=tol, rtol=tol), (
        "mismatch vs reference: max abs err "
        f"{float(jnp.max(jnp.abs(out - ref))):.3e}")
    print("KERNEL_OK")
</pallas_src>

<mosaic_0001>
module attributes {stable_mosaic.version = 11 : i64} {
  func.func @_residual_block_kernel(%arg0: memref<2x4x256xf32, #tpu.memory_space<vmem>>, %arg1: memref<8x36xf32, #tpu.memory_space<vmem>>, %arg2: memref<16x1xf32, #tpu.memory_space<vmem>>, %arg3: memref<4x512xf32, #tpu.memory_space<vmem>>, %arg4: memref<2x4x256xf32, #tpu.memory_space<vmem>>) attributes {dimension_semantics = [], scalar_prefetch = 0 : i64, scratch_operands = 0 : i64, tpu.core_type = #tpu.core_type<tc>} {
    %c0 = arith.constant 0 : index
    %c0_0 = arith.constant 0 : index
    %c0_1 = arith.constant 0 : index
    %0 = vector.load %arg0[%c0, %c0_0, %c0_1] : memref<2x4x256xf32, #tpu.memory_space<vmem>>, vector<1x4x256xf32>
    %1 = vector.shape_cast %0 : vector<1x4x256xf32> to vector<4x256xf32>
    %c1 = arith.constant 1 : index
    %c0_2 = arith.constant 0 : index
    %c0_3 = arith.constant 0 : index
    %2 = vector.load %arg0[%c1, %c0_2, %c0_3] : memref<2x4x256xf32, #tpu.memory_space<vmem>>, vector<1x4x256xf32>
    %3 = vector.shape_cast %2 : vector<1x4x256xf32> to vector<4x256xf32>
    %4 = tpu.concatenate %1, %3 in 1 : vector<4x256xf32>, vector<4x256xf32> -> vector<4x512xf32>
    %c0_4 = arith.constant 0 : index
    %c0_5 = arith.constant 0 : index
    %5 = vector.load %arg3[%c0_4, %c0_5] : memref<4x512xf32, #tpu.memory_space<vmem>>, vector<1x512xf32>
    %cst = arith.constant 0.000000e+00 : f32
    %6 = vector.broadcast %cst : f32 to vector<1x512xf32>
    %7 = arith.cmpf ogt, %5, %6 : vector<1x512xf32>
    %c1_6 = arith.constant 1 : index
    %c0_7 = arith.constant 0 : index
    %8 = vector.load %arg3[%c1_6, %c0_7] : memref<4x512xf32, #tpu.memory_space<vmem>>, vector<1x512xf32>
    %cst_8 = arith.constant 0.000000e+00 : f32
    %9 = vector.broadcast %cst_8 : f32 to vector<1x512xf32>
    %10 = arith.cmpf ogt, %8, %9 : vector<1x512xf32>
    %c2 = arith.constant 2 : index
    %c0_9 = arith.constant 0 : index
    %11 = vector.load %arg3[%c2, %c0_9] : memref<4x512xf32, #tpu.memory_space<vmem>>, vector<1x512xf32>
    %cst_10 = arith.constant 0.000000e+00 : f32
    %12 = vector.broadcast %cst_10 : f32 to vector<1x512xf32>
    %13 = arith.cmpf ogt, %11, %12 : vector<1x512xf32>
    %c3 = arith.constant 3 : index
    %c0_11 = arith.constant 0 : index
    %14 = vector.load %arg3[%c3, %c0_11] : memref<4x512xf32, #tpu.memory_space<vmem>>, vector<1x512xf32>
    %cst_12 = arith.constant 0.000000e+00 : f32
    %15 = vector.broadcast %cst_12 : f32 to vector<1x512xf32>
    %16 = arith.cmpf ogt, %14, %15 : vector<1x512xf32>
    %c0_13 = arith.constant 0 : index
    %c0_14 = arith.constant 0 : index
    %17 = vector.load %arg1[%c0_13, %c0_14] : memref<8x36xf32, #tpu.memory_space<vmem>>, vector<4x36xf32>
    %c4 = arith.constant 4 : index
    %c0_15 = arith.constant 0 : index
    %18 = vector.load %arg1[%c4, %c0_15] : memref<8x36xf32, #tpu.memory_space<vmem>>, vector<4x36xf32>
    %c0_16 = arith.constant 0 : index
    %c0_17 = arith.constant 0 : index
    %19 = vector.load %arg2[%c0_16, %c0_17] : memref<16x1xf32, #tpu.memory_space<vmem>>, vector<4x1xf32>
    %c4_18 = arith.constant 4 : index
    %c0_19 = arith.constant 0 : index
    %20 = vector.load %arg2[%c4_18, %c0_19] : memref<16x1xf32, #tpu.memory_space<vmem>>, vector<4x1xf32>
    %c8 = arith.constant 8 : index
    %c0_20 = arith.constant 0 : index
    %21 = vector.load %arg2[%c8, %c0_20] : memref<16x1xf32, #tpu.memory_space<vmem>>, vector<4x1xf32>
    %c12 = arith.constant 12 : index
    %c0_21 = arith.constant 0 : index
    %22 = vector.load %arg2[%c12, %c0_21] : memref<16x1xf32, #tpu.memory_space<vmem>>, vector<4x1xf32>
    %23 = vector.extract_strided_slice %4 {offsets = [0, 496], sizes = [4, 16], strides = [1, 1]} : vector<4x512xf32> to vector<4x16xf32>
    %24 = vector.extract_strided_slice %4 {offsets = [0, 0], sizes = [4, 496], strides = [1, 1]} : vector<4x512xf32> to vector<4x496xf32>
    %25 = tpu.concatenate %23, %24 in 1 : vector<4x16xf32>, vector<4x496xf32> -> vector<4x512xf32>
    %26 = vector.extract_strided_slice %4 {offsets = [0, 16], sizes = [4, 496], strides = [1, 1]} : vector<4x512xf32> to vector<4x496xf32>
    %27 = vector.extract_strided_slice %4 {offsets = [0, 0], sizes = [4, 16], strides = [1, 1]} : vector<4x512xf32> to vector<4x16xf32>
    %28 = tpu.concatenate %26, %27 in 1 : vector<4x496xf32>, vector<4x16xf32> -> vector<4x512xf32>
    %29 = vector.shape_cast %7 : vector<1x512xi1> to vector<1x512xi1>
    %30 = vector.broadcast %29 : vector<1x512xi1> to vector<4x512xi1>
    %31 = arith.select %30, %28, %25 : vector<4x512xi1>, vector<4x512xf32>
    %32 = vector.extract_strided_slice %31 {offsets = [0, 511], sizes = [4, 1], strides = [1, 1]} : vector<4x512xf32> to vector<4x1xf32>
    %33 = vector.extract_strided_slice %31 {offsets = [0, 0], sizes = [4, 511], strides = [1, 1]} : vector<4x512xf32> to vector<4x511xf32>
    %34 = tpu.concatenate %32, %33 in 1 : vector<4x1xf32>, vector<4x511xf32> -> vector<4x512xf32>
    %35 = vector.extract_strided_slice %31 {offsets = [0, 1], sizes = [4, 511], strides = [1, 1]} : vector<4x512xf32> to vector<4x511xf32>
    %36 = vector.extract_strided_slice %31 {offsets = [0, 0], sizes = [4, 1], strides = [1, 1]} : vector<4x512xf32> to vector<4x1xf32>
    %37 = tpu.concatenate %35, %36 in 1 : vector<4x511xf32>, vector<4x1xf32> -> vector<4x512xf32>
    %38 = vector.shape_cast %13 : vector<1x512xi1> to vector<1x512xi1>
    %39 = vector.broadcast %38 : vector<1x512xi1> to vector<4x512xi1>
    %40 = arith.select %39, %37, %34 : vector<4x512xi1>, vector<4x512xf32>
    %41 = vector.shape_cast %16 : vector<1x512xi1> to vector<1x512xi1>
    %42 = vector.broadcast %41 : vector<1x512xi1> to vector<4x512xi1>
    %43 = arith.select %42, %34, %37 : vector<4x512xi1>, vector<4x512xf32>
    %44 = vector.extract_strided_slice %4 {offsets = [0, 511], sizes = [4, 1], strides = [1, 1]} : vector<4x512xf32> to vector<4x1xf32>
    %45 = vector.extract_strided_slice %4 {offsets = [0, 0], sizes = [4, 511], strides = [1, 1]} : vector<4x512xf32> to vector<4x511xf32>
    %46 = tpu.concatenate %44, %45 in 1 : vector<4x1xf32>, vector<4x511xf32> -> vector<4x512xf32>
    %47 = vector.extract_strided_slice %4 {offsets = [0, 1], sizes = [4, 511], strides = [1, 1]} : vector<4x512xf32> to vector<4x511xf32>
    %48 = vector.extract_strided_slice %4 {offsets = [0, 0], sizes = [4, 1], strides = [1, 1]} : vector<4x512xf32> to vector<4x1xf32>
    %49 = tpu.concatenate %47, %48 in 1 : vector<4x511xf32>, vector<4x1xf32> -> vector<4x512xf32>
    %50 = vector.shape_cast %13 : vector<1x512xi1> to vector<1x512xi1>
    %51 = vector.broadcast %50 : vector<1x512xi1> to vector<4x512xi1>
    %52 = arith.select %51, %49, %46 : vector<4x512xi1>, vector<4x512xf32>
    %53 = vector.shape_cast %16 : vector<1x512xi1> to vector<1x512xi1>
    %54 = vector.broadcast %53 : vector<1x512xi1> to vector<4x512xi1>
    %55 = arith.select %54, %46, %49 : vector<4x512xi1>, vector<4x512xf32>
    %56 = vector.shape_cast %10 : vector<1x512xi1> to vector<1x512xi1>
    %57 = vector.broadcast %56 : vector<1x512xi1> to vector<4x512xi1>
    %58 = arith.select %57, %25, %28 : vector<4x512xi1>, vector<4x512xf32>
    %59 = vector.extract_strided_slice %58 {offsets = [0, 511], sizes = [4, 1], strides = [1, 1]} : vector<4x512xf32> to vector<4x1xf32>
    %60 = vector.extract_strided_slice %58 {offsets = [0, 0], sizes = [4, 511], strides = [1, 1]} : vector<4x512xf32> to vector<4x511xf32>
    %61 = tpu.concatenate %59, %60 in 1 : vector<4x1xf32>, vector<4x511xf32> -> vector<4x512xf32>
    %62 = vector.extract_strided_slice %58 {offsets = [0, 1], sizes = [4, 511], strides = [1, 1]} : vector<4x512xf32> to vector<4x511xf32>
    %63 = vector.extract_strided_slice %58 {offsets = [0, 0], sizes = [4, 1], strides = [1, 1]} : vector<4x512xf32> to vector<4x1xf32>
    %64 = tpu.concatenate %62, %63 in 1 : vector<4x511xf32>, vector<4x1xf32> -> vector<4x512xf32>
    %65 = vector.shape_cast %13 : vector<1x512xi1> to vector<1x512xi1>
    %66 = vector.broadcast %65 : vector<1x512xi1> to vector<4x512xi1>
    %67 = arith.select %66, %64, %61 : vector<4x512xi1>, vector<4x512xf32>
    %68 = vector.shape_cast %16 : vector<1x512xi1> to vector<1x512xi1>
    %69 = vector.broadcast %68 : vector<1x512xi1> to vector<4x512xi1>
    %70 = arith.select %69, %61, %64 : vector<4x512xi1>, vector<4x512xf32>
    %71 = tpu.concatenate %40, %31, %43, %52, %4, %55, %67, %58, %70 in 0 : vector<4x512xf32>, vector<4x512xf32>, vector<4x512xf32>, vector<4x512xf32>, vector<4x512xf32>, vector<4x512xf32>, vector<4x512xf32>, vector<4x512xf32>, vector<4x512xf32> -> vector<36x512xf32>
    %cst_22 = arith.constant dense<0.000000e+00> : vector<4x512xf32>
    %72 = tpu.matmul %17, %71, %cst_22 {dimension_numbers = #tpu.dot_dimension_numbers<[1], [0], [0], [1], [0, 0, 1, 1], [], []>} : vector<4x36xf32>, vector<36x512xf32>, vector<4x512xf32> -> vector<4x512xf32>
    %cst_23 = arith.constant dense<0.000000e+00> : vector<4xf32>
    %73 = vector.multi_reduction <add>, %72, %cst_23 [1] : vector<4x512xf32> to vector<4xf32>
    %74 = vector.shape_cast %73 : vector<4xf32> to vector<4x1xf32>
    %75 = arith.mulf %72, %72 : vector<4x512xf32>
    %cst_24 = arith.constant dense<0.000000e+00> : vector<4xf32>
    %76 = vector.multi_reduction <add>, %75, %cst_24 [1] : vector<4x512xf32> to vector<4xf32>
    %77 = vector.shape_cast %76 : vector<4xf32> to vector<4x1xf32>
    %cst_25 = arith.constant 0.001953125 : f32
    %78 = vector.broadcast %cst_25 : f32 to vector<4x1xf32>
    %79 = arith.mulf %74, %78 : vector<4x1xf32>
    %cst_26 = arith.constant 0.001953125 : f32
    %80 = vector.broadcast %cst_26 : f32 to vector<4x1xf32>
    %81 = arith.mulf %77, %80 : vector<4x1xf32>
    %82 = arith.mulf %79, %79 : vector<4x1xf32>
    %83 = arith.subf %81, %82 : vector<4x1xf32>
    %cst_27 = arith.constant 0.000000e+00 : f32
    %84 = vector.broadcast %cst_27 : f32 to vector<4x1xf32>
    %85 = arith.maximumf %83, %84 : vector<4x1xf32>
    %cst_28 = arith.constant 9.99999974E-6 : f32
    %86 = vector.broadcast %cst_28 : f32 to vector<4x1xf32>
    %87 = arith.addf %85, %86 : vector<4x1xf32>
    %88 = math.rsqrt %87 : vector<4x1xf32>
    %89 = arith.mulf %19, %88 : vector<4x1xf32>
    %90 = arith.mulf %79, %89 : vector<4x1xf32>
    %91 = arith.subf %20, %90 : vector<4x1xf32>
    %92 = vector.broadcast %89 : vector<4x1xf32> to vector<4x512xf32>
    %93 = arith.mulf %72, %92 : vector<4x512xf32>
    %94 = vector.broadcast %91 : vector<4x1xf32> to vector<4x512xf32>
    %95 = arith.addf %93, %94 : vector<4x512xf32>
    %cst_29 = arith.constant 0.000000e+00 : f32
    %96 = vector.broadcast %cst_29 : f32 to vector<4x512xf32>
    %97 = arith.maximumf %95, %96 : vector<4x512xf32>
    %98 = vector.extract_strided_slice %97 {offsets = [0, 496], sizes = [4, 16], strides = [1, 1]} : vector<4x512xf32> to vector<4x16xf32>
    %99 = vector.extract_strided_slice %97 {offsets = [0, 0], sizes = [4, 496], strides = [1, 1]} : vector<4x512xf32> to vector<4x496xf32>
    %100 = tpu.concatenate %98, %99 in 1 : vector<4x16xf32>, vector<4x496xf32> -> vector<4x512xf32>
    %101 = vector.extract_strided_slice %97 {offsets = [0, 16], sizes = [4, 496], strides = [1, 1]} : vector<4x512xf32> to vector<4x496xf32>
    %102 = vector.extract_strided_slice %97 {offsets = [0, 0], sizes = [4, 16], strides = [1, 1]} : vector<4x512xf32> to vector<4x16xf32>
    %103 = tpu.concatenate %101, %102 in 1 : vector<4x496xf32>, vector<4x16xf32> -> vector<4x512xf32>
    %104 = vector.shape_cast %7 : vector<1x512xi1> to vector<1x512xi1>
    %105 = vector.broadcast %104 : vector<1x512xi1> to vector<4x512xi1>
    %106 = arith.select %105, %103, %100 : vector<4x512xi1>, vector<4x512xf32>
    %107 = vector.extract_strided_slice %106 {offsets = [0, 511], sizes = [4, 1], strides = [1, 1]} : vector<4x512xf32> to vector<4x1xf32>
    %108 = vector.extract_strided_slice %106 {offsets = [0, 0], sizes = [4, 511], strides = [1, 1]} : vector<4x512xf32> to vector<4x511xf32>
    %109 = tpu.concatenate %107, %108 in 1 : vector<4x1xf32>, vector<4x511xf32> -> vector<4x512xf32>
    %110 = vector.extract_strided_slice %106 {offsets = [0, 1], sizes = [4, 511], strides = [1, 1]} : vector<4x512xf32> to vector<4x511xf32>
    %111 = vector.extract_strided_slice %106 {offsets = [0, 0], sizes = [4, 1], strides = [1, 1]} : vector<4x512xf32> to vector<4x1xf32>
    %112 = tpu.concatenate %110, %111 in 1 : vector<4x511xf32>, vector<4x1xf32> -> vector<4x512xf32>
    %113 = vector.shape_cast %13 : vector<1x512xi1> to vector<1x512xi1>
    %114 = vector.broadcast %113 : vector<1x512xi1> to vector<4x512xi1>
    %115 = arith.select %114, %112, %109 : vector<4x512xi1>, vector<4x512xf32>
    %116 = vector.shape_cast %16 : vector<1x512xi1> to vector<1x512xi1>
    %117 = vector.broadcast %116 : vector<1x512xi1> to vector<4x512xi1>
    %118 = arith.select %117, %109, %112 : vector<4x512xi1>, vector<4x512xf32>
    %119 = vector.extract_strided_slice %97 {offsets = [0, 511], sizes = [4, 1], strides = [1, 1]} : vector<4x512xf32> to vector<4x1xf32>
    %120 = vector.extract_strided_slice %97 {offsets = [0, 0], sizes = [4, 511], strides = [1, 1]} : vector<4x512xf32> to vector<4x511xf32>
    %121 = tpu.concatenate %119, %120 in 1 : vector<4x1xf32>, vector<4x511xf32> -> vector<4x512xf32>
    %122 = vector.extract_strided_slice %97 {offsets = [0, 1], sizes = [4, 511], strides = [1, 1]} : vector<4x512xf32> to vector<4x511xf32>
    %123 = vector.extract_strided_slice %97 {offsets = [0, 0], sizes = [4, 1], strides = [1, 1]} : vector<4x512xf32> to vector<4x1xf32>
    %124 = tpu.concatenate %122, %123 in 1 : vector<4x511xf32>, vector<4x1xf32> -> vector<4x512xf32>
    %125 = vector.shape_cast %13 : vector<1x512xi1> to vector<1x512xi1>
    %126 = vector.broadcast %125 : vector<1x512xi1> to vector<4x512xi1>
    %127 = arith.select %126, %124, %121 : vector<4x512xi1>, vector<4x512xf32>
    %128 = vector.shape_cast %16 : vector<1x512xi1> to vector<1x512xi1>
    %129 = vector.broadcast %128 : vector<1x512xi1> to vector<4x512xi1>
    %130 = arith.select %129, %121, %124 : vector<4x512xi1>, vector<4x512xf32>
    %131 = vector.shape_cast %10 : vector<1x512xi1> to vector<1x512xi1>
    %132 = vector.broadcast %131 : vector<1x512xi1> to vector<4x512xi1>
    %133 = arith.select %132, %100, %103 : vector<4x512xi1>, vector<4x512xf32>
    %134 = vector.extract_strided_slice %133 {offsets = [0, 511], sizes = [4, 1], strides = [1, 1]} : vector<4x512xf32> to vector<4x1xf32>
    %135 = vector.extract_strided_slice %133 {offsets = [0, 0], sizes = [4, 511], strides = [1, 1]} : vector<4x512xf32> to vector<4x511xf32>
    %136 = tpu.concatenate %134, %135 in 1 : vector<4x1xf32>, vector<4x511xf32> -> vector<4x512xf32>
    %137 = vector.extract_strided_slice %133 {offsets = [0, 1], sizes = [4, 511], strides = [1, 1]} : vector<4x512xf32> to vector<4x511xf32>
    %138 = vector.extract_strided_slice %133 {offsets = [0, 0], sizes = [4, 1], strides = [1, 1]} : vector<4x512xf32> to vector<4x1xf32>
    %139 = tpu.concatenate %137, %138 in 1 : vector<4x511xf32>, vector<4x1xf32> -> vector<4x512xf32>
    %140 = vector.shape_cast %13 : vector<1x512xi1> to vector<1x512xi1>
    %141 = vector.broadcast %140 : vector<1x512xi1> to vector<4x512xi1>
    %142 = arith.select %141, %139, %136 : vector<4x512xi1>, vector<4x512xf32>
    %143 = vector.shape_cast %16 : vector<1x512xi1> to vector<1x512xi1>
    %144 = vector.broadcast %143 : vector<1x512xi1> to vector<4x512xi1>
    %145 = arith.select %144, %136, %139 : vector<4x512xi1>, vector<4x512xf32>
    %146 = tpu.concatenate %115, %106, %118, %127, %97, %130, %142, %133, %145 in 0 : vector<4x512xf32>, vector<4x512xf32>, vector<4x512xf32>, vector<4x512xf32>, vector<4x512xf32>, vector<4x512xf32>, vector<4x512xf32>, vector<4x512xf32>, vector<4x512xf32> -> vector<36x512xf32>
    %cst_30 = arith.constant dense<0.000000e+00> : vector<4x512xf32>
    %147 = tpu.matmul %18, %146, %cst_30 {dimension_numbers = #tpu.dot_dimension_numbers<[1], [0], [0], [1], [0, 0, 1, 1], [], []>} : vector<4x36xf32>, vector<36x512xf32>, vector<4x512xf32> -> vector<4x512xf32>
    %cst_31 = arith.constant dense<0.000000e+00> : vector<4xf32>
    %148 = vector.multi_reduction <add>, %147, %cst_31 [1] : vector<4x512xf32> to vector<4xf32>
    %149 = vector.shape_cast %148 : vector<4xf32> to vector<4x1xf32>
    %150 = arith.mulf %147, %147 : vector<4x512xf32>
    %cst_32 = arith.constant dense<0.000000e+00> : vector<4xf32>
    %151 = vector.multi_reduction <add>, %150, %cst_32 [1] : vector<4x512xf32> to vector<4xf32>
    %152 = vector.shape_cast %151 : vector<4xf32> to vector<4x1xf32>
    %cst_33 = arith.constant 0.001953125 : f32
    %153 = vector.broadcast %cst_33 : f32 to vector<4x1xf32>
    %154 = arith.mulf %149, %153 : vector<4x1xf32>
    %cst_34 = arith.constant 0.001953125 : f32
    %155 = vector.broadcast %cst_34 : f32 to vector<4x1xf32>
    %156 = arith.mulf %152, %155 : vector<4x1xf32>
    %157 = arith.mulf %154, %154 : vector<4x1xf32>
    %158 = arith.subf %156, %157 : vector<4x1xf32>
    %cst_35 = arith.constant 0.000000e+00 : f32
    %159 = vector.broadcast %cst_35 : f32 to vector<4x1xf32>
    %160 = arith.maximumf %158, %159 : vector<4x1xf32>
    %cst_36 = arith.constant 9.99999974E-6 : f32
    %161 = vector.broadcast %cst_36 : f32 to vector<4x1xf32>
    %162 = arith.addf %160, %161 : vector<4x1xf32>
    %163 = math.rsqrt %162 : vector<4x1xf32>
    %164 = arith.mulf %21, %163 : vector<4x1xf32>
    %165 = arith.mulf %154, %164 : vector<4x1xf32>
    %166 = arith.subf %22, %165 : vector<4x1xf32>
    %167 = vector.broadcast %164 : vector<4x1xf32> to vector<4x512xf32>
    %168 = arith.mulf %147, %167 : vector<4x512xf32>
    %169 = vector.broadcast %166 : vector<4x1xf32> to vector<4x512xf32>
    %170 = arith.addf %168, %169 : vector<4x512xf32>
    %171 = arith.addf %170, %4 : vector<4x512xf32>
    %172 = vector.extract_strided_slice %171 {offsets = [0, 0], sizes = [4, 256], strides = [1, 1]} : vector<4x512xf32> to vector<4x256xf32>
    %c0_37 = arith.constant 0 : index
    %c0_38 = arith.constant 0 : index
    %c0_39 = arith.constant 0 : index
    %173 = vector.load %arg4[%c0_37, %c0_38, %c0_39] : memref<2x4x256xf32, #tpu.memory_space<vmem>>, vector<1x4x256xf32>
    %174 = vector.shape_cast %173 : vector<1x4x256xf32> to vector<4x256xf32>
    %175 = vector.shape_cast %172 : vector<4x256xf32> to vector<1x4x256xf32>
    tpu.vector_store %arg4[%c0_37, %c0_38, %c0_39], %175 {strides = array<i32>} : memref<2x4x256xf32, #tpu.memory_space<vmem>>, vector<1x4x256xf32>,
    %176 = vector.extract_strided_slice %171 {offsets = [0, 256], sizes = [4, 256], strides = [1, 1]} : vector<4x512xf32> to vector<4x256xf32>
    %c1_40 = arith.constant 1 : index
    %c0_41 = arith.constant 0 : index
    %c0_42 = arith.constant 0 : index
    %177 = vector.load %arg4[%c1_40, %c0_41, %c0_42] : memref<2x4x256xf32, #tpu.memory_space<vmem>>, vector<1x4x256xf32>
    %178 = vector.shape_cast %177 : vector<1x4x256xf32> to vector<4x256xf32>
    %179 = vector.shape_cast %176 : vector<4x256xf32> to vector<1x4x256xf32>
    tpu.vector_store %arg4[%c1_40, %c0_41, %c0_42], %179 {strides = array<i32>} : memref<2x4x256xf32, #tpu.memory_space<vmem>>, vector<1x4x256xf32>,
    return
  }
}

</mosaic_0001>

<bundles_post_ra>
// kernel: tpu_custom_call.1
= control target key start
LH: loop header
LB: loop body
LE: loop exit
PB: predicated region body
PF: predicated region fallthrough
CT: control target
= control target key end

     0   :  { %9 = vsyncpa [#allocation3], 0  ;;  %s1993_s0 = inlined_call_operand.vmem [shape: f32[2,4,256], index: 0, kind: input, shape index: {}]   ;;  %s1994_s1 = inlined_call_operand.hbm [shape: f32[8,36], index: 1, kind: input, shape index: {}]   ;;  %s1995_s2 = inlined_call_operand.vmem [shape: f32[16,1], index: 2, kind: input, shape index: {}]   ;;  %s1996_s3 = inlined_call_operand.hbm [shape: f32[4,512], index: 3, kind: input, shape index: {}]   ;;  %s1997_s4 = inlined_call_operand.hbm [shape: f32[2,4,256], index: 4, kind: output, shape index: {}]  }
   0x1   :  { %10 = vsyncpa [#allocation6], 0 }
   0x2   :  { %11 = vsyncpa [#allocation4], 0  ;;  %s1295_s15 = smov [#allocation2]   ;;  %s1296_s17 = smov [#allocation5]  }
   0x3   :  { %s20_s16 = sshll.u32 %s1295_s15, 4  ;;  %s32_s18 = sshll.u32 %s1296_s17, 4  ;;  %s21_s16 = int_to_ptr.vmem [resolvable:$true] %s20_s16  ;;  %s33_s18 = int_to_ptr.vmem [resolvable:$true] %s32_s18 }
   0x4   :  { %s1223_s21 = scalar_lea.hbm %s1994_s1, 128 }
   0x5   :  { %p1224_p0 = scmp.ne.s32.totalorder %s1994_s1, %s1223_s21  ;;  %p1227_p1 = scmp.lt.u32.totalorder %s1223_s21, %s1994_s1 }
   0x7   :  { %p1229_p2 = pnand %p1227_p1, %p1224_p0 }
   0x9   :  { %1232 = shalt.err (!%p1229_p2)
}
   0xa   :  { %s1233_s26 = scalar_lea.vmem %s21_s16, 128  ;;  %p1238_p4 = scmp.lt.s32.totalorder %s21_s16, %s21_s16 }
   0xb   :  { %p1234_p3 = scmp.ne.s32.totalorder %s21_s16, %s1233_s26  ;;  %p1239_p5 = scmp.lt.s32.totalorder %s1233_s26, %s1233_s26 }
   0xd   :  { %p1240_p6 = por %p1239_p5, %p1238_p4 }
   0xf   :  { %p1241_p7 = pnand %p1240_p6, %p1234_p3 }
  0x11   :  { %1244 = shalt.err (!%p1241_p7)
}
  0x12   :  { %23 = dma.hbm_to_vmem [thread:$0]  %s1994_s1, 128, %s21_s16, [#allocation3]  }
  0x13   :  { %s1245_s5 = scalar_lea.hbm %s1996_s3, 256 }
  0x14   :  { %p1246_p8 = scmp.ne.s32.totalorder %s1996_s3, %s1245_s5  ;;  %p1249_p9 = scmp.lt.u32.totalorder %s1245_s5, %s1996_s3 }
  0x16   :  { %p1251_p10 = pnand %p1249_p9, %p1246_p8 }
  0x18   :  { %1254 = shalt.err (!%p1251_p10)
}
  0x19   :  { %s1255_s10 = scalar_lea.vmem %s33_s18, 256  ;;  %p1260_p12 = scmp.lt.s32.totalorder %s33_s18, %s33_s18 }
  0x1a   :  { %p1256_p11 = scmp.ne.s32.totalorder %s33_s18, %s1255_s10  ;;  %p1261_p13 = scmp.lt.s32.totalorder %s1255_s10, %s1255_s10 }
  0x1c   :  { %p1262_p0 = por %p1261_p13, %p1260_p12 }
  0x1e   :  { %p1263_p1 = pnand %p1262_p0, %p1256_p11 }
  0x20   :  { %1266 = shalt.err (!%p1263_p1)
}
  0x21   :  { %35 = dma.hbm_to_vmem [thread:$0]  %s1996_s3, 256, %s33_s18, [#allocation6]  }
  0x22   :  { %1289 = dma.done.wait [#allocation3], 128  }
  0x23   :  { %1290 = vsyncadd [#allocation3], 4294967168 }
  0x24   :  { %1291 = dma.done.wait [#allocation6], 256  }
  0x25   :  { %1292 = vsyncadd [#allocation6], 4294967040  ;;  %v1297_v0 = vmov 0   ;;  %v1360_v1 = vld [vmem:[%s1993_s0 + $0x8] sm:$0xff]  ;;  %v1365_v2 = vld [vmem:[%s1993_s0] sm:$0xff]  ;;  %s1298_s3 = smov 16   ;;  %v105_v7 = vlaneseq }
  0x26   :  { %1173 = vset.pattern.permute.xlu0 %v1297_v0  ;;  %1174 = vset.pattern.permute.xlu1 %v1297_v0  ;;  %v1373_v3 = vcombine.high %v1365_v2, %v1365_v2  ;;  %s1299_s16 = smov 112   ;;  %v1381_v4 = vcombine.high %v1360_v1, %v1360_v1  ;;  %s1300_s17 = smov 1   ;;  %v51_v8 = vld [vmem:[#allocation5] ss:$4 sm:$0xf]  ;;  %vm1998_vm1 = vcmask 916480  }
  0x27   :  { %75 = vrot.lane.b32.xlu1 %v1360_v1, %s1298_s3  ;;  %71 = vrot.lane.b32.xlu0 %v1365_v2, %s1298_s3  ;;  %s1301_s18 = smov 127   ;;  %v106_v9 = vshrl.u32 %v105_v7, 7  ;;  %vm52_vm0 = vcmp.gt.f32.partialorder %v51_v8, 0.0  ;;  %vm1999_vm3 = vcmask 130048   ;;  %v2018_v31 = vmov 0  ;;  %s1303_s27 = smov [#allocation7]  }
  0x28   :  { %v1133_v5 = vpack.i.bf16 %v1373_v3, %v1365_v2  ;;  %v1138_v6 = vpack.i.bf16 %v1360_v1, %v1373_v3  ;;  %v104_v13 = vsel %vm52_vm0, 1, %v1297_v0  ;;  %v54_v26 = vld [vmem:[#allocation5 + $0x1] ss:$4 sm:$0xf]  ;;  %v2022_v51 = vmov 0  ;;  %s1064_s28 = sshll.u32 %s1303_s27, 4  ;;  %s1065_s28 = int_to_ptr.vmem [resolvable:$true] %s1064_s28 }
  0x29   :  { %v1397_v10 = vsub.s32 0, %v106_v9  ;;  %v1401_v15 = vsub.s32 1, %v106_v9  ;;  %v1403_v16 = vsub.s32 3, %v106_v9  ;;  %v1405_v19 = vsub.s32 2, %v106_v9  ;;  %s1267_s6 = scalar_lea.vmem %s1065_s28, 256  ;;  %p1272_p3 = scmp.lt.s32.totalorder %s1065_s28, %s1065_s28 }
  0x2a   :  { %vm55_vm6 = vcmp.gt.f32.partialorder %v54_v26, 0.0  ;;  %v2024_v55 = vmov 0  ;;  %v2026_v59 = vmov 0  ;;  %v2028_v60 = vmov 0  ;;  %p1268_p2 = scmp.ne.s32.totalorder %s1065_s28, %s1267_s6  ;;  %p1273_p4 = scmp.lt.s32.totalorder %s1267_s6, %s1267_s6 }
  0x2b   :  { %86 = vrot.lane.b32.xlu0 %v1365_v2, %s1299_s16  ;;  %73 = vrot.lane.b32.xlu1 %v1373_v3, %s1298_s3  ;;  %v108_v14 = vrot.slane %v104_v13, %v1397_v10  ;;  %v112_v21 = vrot.slane %v104_v13, %v1401_v15  ;;  %v120_v22 = vrot.slane %v104_v13, %v1403_v16  ;;  %v261_v43 = vsel %vm55_vm6, 1, %v1297_v0 }
  0x2c   :  { %v116_v25 = vrot.slane %v104_v13, %v1405_v19  ;;  %v265_v48 = vrot.slane %v261_v43, %v1397_v10  ;;  %v269_v52 = vrot.slane %v261_v43, %v1401_v15  ;;  %v277_v56 = vrot.slane %v261_v43, %v1403_v16  ;;  %p1274_p5 = por %p1273_p4, %p1272_p3 }
  0x2d   :  { %vm1407_vm2 = vcmp.eq.s32.totalorder %v108_v14, 1  ;;  %vm1420_vm4 = vcmp.eq.s32.totalorder %v112_v21, 1  ;;  %vm1424_vm5 = vcmp.eq.s32.totalorder %v120_v22, 1  ;;  %v273_v57 = vrot.slane %v261_v43, %v1405_v19 }
  0x2e   :  { %v2019_v31 = vsel %vm1424_vm5, 4294967295, %v2018_v31  ;;  %vm1431_vm7 = vcmp.eq.s32.totalorder %v116_v25, 1  ;;  %vm1467_vm8 = vcmp.eq.s32.totalorder %v265_v48, 1  ;;  %vm1481_vm9 = vcmp.eq.s32.totalorder %v269_v52, 1  ;;  %p1275_p6 = pnand %p1274_p5, %p1268_p2 }
  0x2f   :  { %68 = vrot.lane.b32.xlu0 %v1381_v4, %s1298_s3  ;;  %88 = vrot.lane.b32.xlu1 %v1373_v3, %s1299_s16  ;;  %v2023_v51 = vsel %vm1467_vm8, 4294967295, %v2022_v51  ;;  %v2025_v55 = vsel %vm1481_vm9, 4294967295, %v2024_v55  ;;  %vm1495_vm10 = vcmp.eq.s32.totalorder %v277_v56, 1  ;;  %vm1499_vm11 = vcmp.eq.s32.totalorder %v273_v57, 1 }
  0x30   :  { %v2027_v59 = vsel %vm1495_vm10, 4294967295, %v2026_v59  ;;  %v2029_v60 = vsel %vm1499_vm11, 4294967295, %v2028_v60  ;;  %v2000_v63 = vmov 0.0   ;;  %vm2002_vm14 = vcmask 7168  }
  0x31   :  { %469 = vmatprep.mubr.f32.mxu0 %v2000_v63  ;;  %540 = vmatprep.mubr.f32.mxu1 %v2000_v63  ;;  %vm2009_vm15 = vcmask 1039360  }
  0x33   :  { %90 = vrot.lane.b32.xlu0 %v1360_v1, %s1299_s16  ;;  %92 = vrot.lane.b32.xlu1 %v1381_v4, %s1299_s16 }
  0x37   :  { %1134 = vrot.lane.b32.xlu0 %v1133_v5, %s1300_s17  ;;  %1139 = vrot.lane.b32.xlu1 %v1138_v6, %s1301_s18  ;;  %v60_v5 = vld [vmem:[#allocation5 + $0x3] ss:$4 sm:$0xf]  ;;  %v57_v6 = vld [vmem:[#allocation5 + $0x2] ss:$4 sm:$0xf] }
  0x38   :  { %vm61_vm12 = vcmp.gt.f32.partialorder %v60_v5, 0.0  ;;  %vm58_vm13 = vcmp.gt.f32.partialorder %v57_v6, 0.0 }
  0x39   :  { %v1526_v8 = vsel %vm61_vm12, 1, %v1297_v0  ;;  %v1529_v9 = vsel %vm58_vm13, 1, %v1297_v0  ;;  %vm2004_vm13 = vcmask 1043456  }
  0x3a   :  { %v198_v13 = vrot.slane %v1526_v8, %v1397_v10  ;;  %v177_v14 = vrot.slane %v1529_v9, %v1401_v15  ;;  %v181_v6 = vrot.slane %v1529_v9, %v1405_v19 }
  0x3c   :  { %vm1551_vm6 = vcmp.eq.s32.totalorder %v177_v14, 1  ;;  %vm1568_vm12 = vcmp.eq.s32.totalorder %v198_v13, 1 }
  0x99   :  { %v76_v11 = vpop.permute.xlu1 %75  ;;  %v72_v12 = vpop.permute.xlu0 %71 }
  0x9d   :  { %v87_v17 = vpop.permute.xlu0 %86  ;;  %v74_v18 = vpop.permute.xlu1 %73 }
  0x9e   :  { %v78_v33 = vsel %vm1999_vm3, %v72_v12, %v74_v18  ;;  %v79_v44 = vsel %vm1999_vm3, %v74_v18, %v76_v11 }
  0xa1   :  { %v69_v23 = vpop.permute.xlu0 %68  ;;  %v89_v24 = vpop.permute.xlu1 %88 }
  0xa2   :  { %v85_v27 = vsel %vm1999_vm3, %v69_v23, %v72_v12  ;;  %v95_v28 = vsel %vm1998_vm1, %v87_v17, %v89_v24  ;;  %v80_v37 = vsel %vm1999_vm3, %v76_v11, %v69_v23  ;;  %v202_v12 = vrot.slane %v1526_v8, %v1401_v15 }
  0xa3   :  { %v1418_v29 = vsel %vm1407_vm2, %v95_v28, %v85_v27  ;;  %v1476_v54 = vsel %vm1467_vm8, %v85_v27, %v95_v28  ;;  %v173_v23 = vrot.slane %v1529_v9, %v1397_v10 }
  0xa4   :  { %v1143_v32 = vpack.i.bf16 %v1418_v29, %v1381_v4  ;;  %vm1547_vm0 = vcmp.eq.s32.totalorder %v202_v12, 1 }
  0xa5   :  { %v91_v34 = vpop.permute.xlu0 %90  ;;  %v93_v36 = vpop.permute.xlu1 %92 }
  0xa6   :  { %v96_v38 = vsel %vm1998_vm1, %v89_v24, %v91_v34  ;;  %v97_v39 = vsel %vm1998_vm1, %v91_v34, %v93_v36  ;;  %v103_v40 = vsel %vm1998_vm1, %v93_v36, %v87_v17  ;;  %1144 = vrot.lane.b32.xlu0 %v1143_v32, %s1300_s17  ;;  %vm1573_vm1 = vcmp.eq.s32.totalorder %v173_v23, 1 }
  0xa7   :  { %v1442_v41 = vsel %vm1420_vm4, %v96_v38, %v78_v33  ;;  %v1446_v42 = vsel %vm1424_vm5, %v103_v40, %v80_v37  ;;  %v1456_v47 = vsel %vm1431_vm7, %v97_v39, %v79_v44  ;;  %v1489_v58 = vsel %vm1481_vm9, %v78_v33, %v96_v38 }
  0xa8   :  { %v1148_v45 = vpack.i.bf16 %v1442_v41, %v1365_v2  ;;  %v1153_v46 = vpack.i.bf16 %v1446_v42, %v1442_v41  ;;  %v1163_v49 = vpack.i.bf16 %v1456_v47, %v1360_v1  ;;  %v1158_v50 = vpack.i.bf16 %v1418_v29, %v1456_v47 }
  0xa9   :  { %v1168_v53 = vpack.i.bf16 %v1446_v42, %v1381_v4  ;;  %v1505_v61 = vsel %vm1495_vm10, %v80_v37, %v103_v40  ;;  %v1509_v62 = vsel %vm1499_vm11, %v79_v44, %v97_v39  ;;  %v1523_v7 = vpop.permute.xlu0 %1134  ;;  %v1531_v11 = vpop.permute.xlu1 %1139  ;;  %v332_v33 = vrot.slane %v1418_v29, 4 }
  0xaa   :  { %1149 = vrot.lane.b32.xlu1 %v1148_v45, %s1301_s18  ;;  %1154 = vrot.lane.b32.xlu0 %v1153_v46, %s1300_s17  ;;  %v1137_v17 = vunpack.i.h.bf16 %v1523_v7  ;;  %v1136_v18 = vunpack.i.l.bf16 %v1523_v7  ;;  %v1142_v0 = vunpack.i.h.bf16 %v1531_v11  ;;  %v1141_v22 = vunpack.i.l.bf16 %v1531_v11 }
  0xab   :  { %v2036_v36 = vmov 0  ;;  %v334_v37 = vrot.slane %v1456_v47, 4  ;;  %v206_v39 = vrot.slane %v1526_v8, %v1405_v19  ;;  %v210_v40 = vrot.slane %v1526_v8, %v1403_v16 }
  0xac   :  { %v1558_v25 = vsel %vm2002_vm14, %v1136_v18, %v1137_v17  ;;  %v1564_v27 = vsel %vm2009_vm15, %v1141_v22, %v1142_v0  ;;  %v2037_v36 = vsel %vm1573_vm1, 4294967295, %v2036_v36  ;;  %v333_v52 = vrot.slane %v1442_v41, 4 }
  0xad   :  { %v254_v45 = vsel %vm1551_vm6, %v1564_v27, %v1558_v25  ;;  %v258_v8 = vsel %vm1547_vm0, %v1558_v25, %v1564_v27  ;;  %vm1610_vm3 = vcmp.eq.s32.totalorder %v206_v39, 1  ;;  %vm1636_vm10 = vcmp.eq.s32.totalorder %v181_v6, 1 }
  0xae   :  { %1164 = vrot.lane.b32.xlu0 %v1163_v49, %s1300_s17  ;;  %1159 = vrot.lane.b32.xlu1 %v1158_v50, %s1301_s18  ;;  %v345_v13 = vrot.slane %v254_v45, 4  ;;  %vm1646_vm11 = vcmp.eq.s32.totalorder %v210_v40, 1  ;;  %v357_v40 = vrot.slane %v258_v8, 4 }
  0xb2   :  { %293 = vrot.lane.b32.xlu0 %v1476_v54, %s1300_s17  ;;  %1169 = vrot.lane.b32.xlu1 %v1168_v53, %s1301_s18  ;;  %v185_v53 = vrot.slane %v1529_v9, %v1403_v16 }
  0xb6   :  { %309 = vrot.lane.b32.xlu0 %v1489_v58, %s1301_s18  ;;  %295 = vrot.lane.b32.xlu1 %v1489_v58, %s1300_s17 }
  0xba   :  { %287 = vrot.lane.b32.xlu0 %v1505_v61, %s1300_s17  ;;  %311 = vrot.lane.b32.xlu1 %v1509_v62, %s1301_s18 }
  0xbe   :  { %297 = vrot.lane.b32.xlu0 %v1509_v62, %s1300_s17  ;;  %307 = vrot.lane.b32.xlu1 %v1476_v54, %s1301_s18 }
  0xc2   :  { %313 = vrot.lane.b32.xlu1 %v1505_v61, %s1301_s18 }
 0x118   :  { %v1541_v21 = vpop.permute.xlu0 %1144 }
 0x119   :  { %v1146_v26 = vunpack.i.l.bf16 %v1541_v21  ;;  %v1147_v46 = vunpack.i.h.bf16 %v1541_v21 }
 0x11b   :  { %v1594_v48 = vsel %vm2002_vm14, %v1146_v26, %v1136_v18 }
 0x11c   :  { %v1566_v10 = vpop.permute.xlu0 %1154  ;;  %v1150_v32 = vpop.permute.xlu1 %1149 }
 0x11d   :  { %v1151_v34 = vunpack.i.l.bf16 %v1150_v32  ;;  %v1157_v38 = vunpack.i.h.bf16 %v1566_v10  ;;  %v1156_v29 = vunpack.i.l.bf16 %v1566_v10  ;;  %v1152_v56 = vunpack.i.h.bf16 %v1150_v32 }
 0x11f   :  { %v1586_v44 = vsel %vm2009_vm15, %v1151_v34, %v1141_v22  ;;  %v150_v41 = vsel %vm2002_vm14, %v1157_v38, %v1147_v46  ;;  %v143_v22 = vsel %vm2002_vm14, %v1147_v46, %v1156_v29  ;;  %vm1632_vm14 = vcmp.eq.s32.totalorder %v185_v53, 1 }
 0x120   :  { %v1165_v49 = vpop.permute.xlu0 %1164  ;;  %v1160_v50 = vpop.permute.xlu1 %1159  ;;  %v253_v5 = vsel %vm1573_vm1, %v1586_v44, %v1594_v48  ;;  %v257_v7 = vsel %vm1568_vm12, %v1594_v48, %v1586_v44 }
 0x121   :  { %v1162_v57 = vunpack.i.h.bf16 %v1160_v50  ;;  %v1161_v12 = vunpack.i.l.bf16 %v1160_v50  ;;  %v1167_v14 = vunpack.i.h.bf16 %v1165_v49  ;;  %v1166_v18 = vunpack.i.l.bf16 %v1165_v49 }
 0x122   :  { %v344_v10 = vrot.slane %v253_v5, 4  ;;  %v2040_v5 = vmov 0 }
 0x123   :  { %v160_v21 = vsel %vm2009_vm15, %v1162_v57, %v1152_v56  ;;  %v161_v23 = vsel %vm2009_vm15, %v1152_v56, %v1161_v12  ;;  %v2041_v5 = vsel %vm1632_vm14, 4294967295, %v2040_v5 }
 0x124   :  { %v1616_v19 = vpop.permute.xlu0 %293  ;;  %v1170_v9 = vpop.permute.xlu1 %1169  ;;  %v190_v25 = vsel %vm1573_vm1, %v160_v21, %v150_v41  ;;  %v215_v27 = vsel %vm1568_vm12, %v150_v41, %v160_v21  ;;  %v191_v45 = vsel %vm1551_vm6, %v161_v23, %v143_v22  ;;  %v216_v46 = vsel %vm1547_vm0, %v143_v22, %v161_v23 }
 0x125   :  { %v1172_v32 = vunpack.i.h.bf16 %v1170_v9  ;;  %v1171_v39 = vunpack.i.l.bf16 %v1170_v9  ;;  %v374_v49 = vsel %vm2004_vm13, %v191_v45, %v333_v52  ;;  %v378_v50 = vsel %vm2004_vm13, %v216_v46, %v345_v13 }
 0x126   :  { %v373_v56 = vsel %vm2004_vm13, %v190_v25, %v332_v33  ;;  %v377_v63 = vsel %vm2004_vm13, %v215_v27, %v344_v10  ;;  %v1090_v41 = vpack.c.bf16 %v378_v50, %v374_v49  ;;  %vm2044_vm13 = vcmask 7168  }
 0x127   :  { %v252_v43 = vsel %vm2009_vm15, %v1171_v39, %v1151_v34  ;;  %v162_v22 = vsel %vm2009_vm15, %v1161_v12, %v1172_v32  ;;  %v246_v52 = vsel %vm2009_vm15, %v1142_v0, %v1171_v39  ;;  %v1092_v9 = vpack.c.bf16 %v377_v63, %v373_v56  ;;  %vm2047_vm9 = vmmov %vm2044_vm13 }
 0x128   :  { %v310_v33 = vpop.permute.xlu0 %309  ;;  %v296_v13 = vpop.permute.xlu1 %295  ;;  %v168_v34 = vsel %vm2009_vm15, %v1172_v32, %v1162_v57  ;;  %v230_v53 = vsel %vm2044_vm13, %v1166_v18, %v1146_v26  ;;  %1091 = vmatprep.subr.bf16.mxu0 %v1090_v41  ;;  %v145_v6 = vsel %vm2047_vm9, %v1167_v14, %v1157_v38  ;;  %v335_v12 = vrot.slane %v1446_v42, 4  ;;  %vm2048_vm8 = vmmov %vm2047_vm9 }
 0x129   :  { %v144_v11 = vsel %vm2048_vm8, %v1156_v29, %v1167_v14  ;;  %vm2049_vm5 = vmmov %vm2048_vm8  ;;  %1093 = vmatpush1.bf16.msra.mxu0 %v1092_v9  ;;  %v193_v63 = vsel %vm1632_vm14, %v168_v34, %v145_v6  ;;  %v256_v26 = vsel %vm1632_vm14, %v252_v43, %v230_v53  ;;  %v218_v8 = vsel %vm1646_vm11, %v145_v6, %v168_v34 }
 0x12a   :  { %v229_v0 = vsel %vm2049_vm5, %v1137_v17, %v1166_v18  ;;  %v347_v57 = vrot.slane %v256_v26, 4  ;;  %v192_v38 = vsel %vm1636_vm10, %v162_v22, %v144_v11  ;;  %v299_v17 = vsel %vm2049_vm5, %v1616_v19, %v296_v13 }
 0x12b   :  { %v255_v42 = vsel %vm1636_vm10, %v246_v52, %v229_v0  ;;  %vm2050_vm8 = vcmask 1043456   ;;  %v217_v32 = vsel %vm1610_vm3, %v144_v11, %v162_v22  ;;  %v356_v46 = vrot.slane %v257_v7, 4 }
 0x12c   :  { %v288_v29 = vpop.permute.xlu0 %287  ;;  %v312_v14 = vpop.permute.xlu1 %311  ;;  %v346_v18 = vrot.slane %v255_v42, 4  ;;  %v376_v27 = vsel %vm2050_vm8, %v193_v63, %v335_v12  ;;  %vm2051_vm9 = vmmov %vm2050_vm8  ;;  %v2055_v56 = vrot.slane %v1489_v58, 4  ;;  %v259_v22 = vsel %vm1610_vm3, %v229_v0, %v246_v52 }
 0x12d   :  { %v316_v25 = vsel %vm2009_vm15, %v310_v33, %v312_v14  ;;  %v380_v10 = vsel %vm2051_vm9, %v218_v8, %v347_v57  ;;  %vm2052_vm13 = vmmov %vm2050_vm8  ;;  %v260_v9 = vsel %vm1646_vm11, %v230_v53, %v252_v43  ;;  %v364_v34 = vrot.slane %v1476_v54, 4 }
 0x12e   :  { %v325_v44 = vsel %vm1551_vm6, %v316_v25, %v299_v17  ;;  %v1098_v48 = vpack.c.bf16 %v380_v10, %v376_v27  ;;  %v375_v39 = vsel %vm2052_vm13, %v192_v38, %v334_v37  ;;  %vm2053_vm5 = vmmov %vm2050_vm8  ;;  %vm2057_vm9 = vcmask 7168  }
 0x12f   :  { %v379_v45 = vsel %vm2053_vm5, %v217_v32, %v346_v18  ;;  %vm2054_vm15 = vmmov %vm2053_vm5  ;;  %v306_v6 = vsel %vm2057_vm9, %v288_v29, %v1616_v19  ;;  %v358_v52 = vrot.slane %v259_v22, 4  ;;  %v359_v0 = vrot.slane %v260_v9, 4  ;;  %v62_v18 = vld [vmem:[#allocation2] sm:$0xf] }
 0x130   :  { %v1100_v49 = vpack.c.bf16 %v379_v45, %v375_v39  ;;  %v382_v50 = vsel %vm2054_vm15, %v1373_v3, %v357_v40  ;;  %vm2056_vm8 = vmmov %vm2053_vm5  ;;  %1099 = vmatprep.subr.bf16.mxu1 %v1098_v48  ;;  %v308_v47 = vpop.permute.xlu1 %307  ;;  %vm2058_vm15 = vcmask 1039360   ;;  %v298_v58 = vpop.permute.xlu0 %297  ;;  %v367_v54 = vrot.slane %v1505_v61, 4 }
 0x131   :  { %v386_v41 = vsel %vm2056_vm8, %v325_v44, %v2055_v56  ;;  %v315_v12 = vsel %vm2058_vm15, %v308_v47, %v310_v33  ;;  %vm2059_vm13 = vmmov %vm2053_vm5  ;;  %v366_v63 = vrot.slane %v1509_v62, 4  ;;  %v329_v61 = vsel %vm1547_vm0, %v299_v17, %v316_v25 }
 0x132   :  { %v1094_v37 = vpack.c.bf16 %v386_v41, %v382_v50  ;;  %1101 = vmatpush1.bf16.msra.mxu1 %v1100_v49  ;;  %v324_v11 = vsel %vm1573_vm1, %v315_v12, %v306_v6  ;;  %v381_v43 = vsel %vm2059_vm13, %v1365_v2, %v356_v46  ;;  %vm2060_vm8 = vmmov %vm2057_vm9  ;;  %v384_v62 = vsel %vm2053_vm5, %v1381_v4, %v359_v0 }
 0x133   :  { %v385_v53 = vsel %vm2053_vm5, %v324_v11, %v364_v34  ;;  %v300_v33 = vsel %vm2060_vm8, %v296_v13, %v298_v58  ;;  %vm2061_vm9 = vmmov %vm2060_vm8  ;;  %v328_v27 = vsel %vm1568_vm12, %v306_v6, %v315_v12 }
 0x134   :  { %1095 = vmatprep.subr.bf16.mxu0 %v1094_v37  ;;  %v314_v19 = vpop.permute.xlu1 %313  ;;  %v1096_v26 = vpack.c.bf16 %v385_v53, %v381_v43  ;;  %v301_v40 = vsel %vm2061_vm9, %v298_v58, %v288_v29  ;;  %vm2062_vm1 = vmmov %vm2058_vm15 }
 0x135   :  { %v317_v57 = vsel %vm2058_vm15, %v312_v14, %v314_v19  ;;  %v323_v38 = vsel %vm2062_vm1, %v314_v19, %v308_v47  ;;  %vm2063_vm13 = vmmov %vm2053_vm5  ;;  %vm389_vm15 = vcmask 293888  }
 0x136   :  { %v326_v42 = vsel %vm1636_vm10, %v317_v57, %v300_v33  ;;  %v327_v2 = vsel %vm1632_vm14, %v323_v38, %v301_v40  ;;  %1097 = vmatpush1.bf16.msra.mxu0 %v1096_v26  ;;  %vm2064_vm8 = vmmov %vm2053_vm5  ;;  %v331_v17 = vsel %vm1646_vm11, %v301_v40, %v323_v38  ;;  %v330_v25 = vsel %vm1610_vm3, %v300_v33, %v317_v57  ;;  %v64_v57 = vld [vmem:[%s1995_s2] sm:$0xf] }
 0x137   :  { %1078 = vmatprep.subr.msk.mxu0 %vm2063_vm13, %v329_v61  ;;  %v388_v13 = vsel %vm2064_vm8, %v327_v2, %v367_v54  ;;  %vm2065_vm9 = vmmov %vm2053_vm5  ;;  %v65_v2 = vld [vmem:[%s1995_s2 + $0x4] sm:$0xf] }
 0x138   :  { %v383_v7 = vsel %vm2065_vm9, %v1360_v1, %v358_v52  ;;  %vm2066_vm1 = vmmov %vm2053_vm5  ;;  %v1102_v14 = vpack.c.bf16 %v388_v13, %v384_v62  ;;  %v2069_v1 = vmov 0.0  }
 0x139   :  { %v387_v29 = vsel %vm2066_vm1, %v326_v42, %v366_v63  ;;  %vm2067_vm14 = vmmov %vm2066_vm1 }
 0x13a   :  { %v1104_v8 = vpack.c.bf16 %v387_v29, %v383_v7  ;;  %1079 = vmatpush1.msk.msra.mxu0 %vm2067_vm14, %v328_v27  ;;  %1103 = vmatprep.subr.bf16.mxu1 %v1102_v14  ;;  %vm2068_vm13 = vmmov %vm2066_vm1 }
 0x13b   :  { %1080 = vmatmul.mubr.msk.f32.vlgmr.msra.gmra.mrb[0].mxu0 %vm389_vm15, %v62_v18  ;;  %vm2070_vm5 = vmmov %vm2066_vm1 }
 0x13c   :  { %1105 = vmatpush1.bf16.msra.mxu1 %v1104_v8  ;;  %916 = vmatprep.mubr.f32.mxu0 %v2069_v1  ;;  %vm2071_vm14 = vmmov %vm2066_vm1 }
 0x13d   :  { %1081 = vmatprep.subr.msk.mxu1 %vm2068_vm13, %v331_v17  ;;  %vm2072_vm8 = vmmov %vm2066_vm1 }
 0x13e   :  { %vm2073_vm9 = vmmov %vm2066_vm1 }
 0x13f   :  { %vm2074_vm13 = vmmov %vm2066_vm1 }
 0x140   :  { %1082 = vmatpush1.msk.msra.mxu1 %vm2070_vm5, %v330_v25  ;;  %vm2075_vm5 = vmmov %vm2066_vm1 }
 0x141   :  { %1083 = vmatmul.mubr.msk.f32.vlgmr.msra.gmra.mrb[0].mxu1 %vm389_vm15, %v62_v18 }
 0x142   :  { %987 = vmatprep.mubr.f32.mxu1 %v2069_v1 }
 0x20e   :  { %v471_v10 = vpop.f32.mrb[0].mxu0 }
 0x20f   :  { %v547_v32 = vsel %vm2071_vm14, %v471_v10, 0.0  ;;  %v556_v44 = vmul.f32 %v471_v10, %v471_v10  ;;  %v473_v48 = vpop.f32.mrb[1].mxu0  ;;  %vm2076_vm14 = vmmov %vm2066_vm1 }
 0x210   :  { %v548_v39 = vsel %vm2072_vm8, %v473_v48, 0.0  ;;  %v557_v45 = vmul.f32 %v473_v48, %v473_v48  ;;  %vm2077_vm8 = vmmov %vm2066_vm1 }
 0x211   :  { %v560_v46 = vsel %vm2073_vm9, %v556_v44, 0.0  ;;  %v549_v49 = vadd.f32 %v548_v39, %v547_v32  ;;  %vm2078_vm9 = vcmask 130048  }
 0x212   :  { %v561_v50 = vsel %vm2066_vm1, %v557_v45, 0.0  ;;  %vm2079_vm1 = vmmov %vm2078_vm9 }
 0x213   :  { %v562_v41 = vadd.f32 %v561_v50, %v560_v46 }
 0x214   :  { %v542_v56 = vpop.f32.mrb[0].mxu1 }
 0x215   :  { %v550_v22 = vsel %vm2074_vm13, %v542_v56, 0.0  ;;  %v558_v9 = vmul.f32 %v542_v56, %v542_v56  ;;  %v544_v47 = vpop.f32.mrb[1].mxu1  ;;  %vm2080_vm13 = vcmask 916480  }
 0x216   :  { %v559_v37 = vmul.f32 %v544_v47, %v544_v47  ;;  %v551_v34 = vadd.f32 %v550_v22, %v549_v49  ;;  %v552_v6 = vsel %vm2075_vm5, %v544_v47, 0.0  ;;  %vm2081_vm5 = vmmov %vm2080_vm13 }
 0x217   :  { %v563_v12 = vsel %vm2076_vm14, %v558_v9, 0.0  ;;  %vm2082_vm14 = vmmov %vm2079_vm1 }
 0x218   :  { %v553_v58 = vadd.f32 %v552_v6, %v551_v34  ;;  %v564_v11 = vadd.f32 %v563_v12, %v562_v41  ;;  %v565_v52 = vsel %vm2077_vm8, %v559_v37, 0.0  ;;  %vm2083_vm8 = vmmov %vm2079_vm1 }
 0x21a   :  { %554 = vadd.xlane.f32.xlu0 %v553_v58  ;;  %v566_v0 = vadd.f32 %v565_v52, %v564_v11 }
 0x21c   :  { %567 = vadd.xlane.f32.xlu1 %v566_v0 }
 0x2a7   :  { %v555_v43 = vpop.xlane.xlu0 %554 }
 0x2a8   :  { %v569_v53 = vmul.f32 0.001953125, %v555_v43 }
 0x2a9   :  { %v568_v54 = vpop.xlane.xlu1 %567 }
 0x2aa   :  { %v571_v63 = vmul.f32 %v569_v53, %v569_v53  ;;  %v570_v19 = vmul.f32 0.001953125, %v568_v54 }
 0x2ac   :  { %v572_v26 = vsub.f32 %v570_v19, %v571_v63 }
 0x2ae   :  { %v573_v33 = vmax.f32 %v572_v26, 0.0 }
 0x2b0   :  { %v574_v40 = vadd.f32 1e-05, %v573_v33 }
 0x2b2   :  { %1217 = vrsqrt.f32 %v574_v40 }
 0x2bc   :  { %v1218_v38 = vpop.eup %1217 }
 0x2bd   :  { %v576_v42 = vmul.f32 %v1218_v38, %v64_v57 }
 0x2bf   :  { %581 = vperm.xlu0 %1173, %v576_v42   ;;  %v577_v61 = vmul.f32 %v576_v42, %v569_v53 }
 0x2c1   :  { %v578_v62 = vsub.f32 %v65_v2, %v577_v61 }
 0x2c3   :  { %590 = vperm.xlu1 %1174, %v578_v62  }
 0x33e   :  { %v582_v13 = vpop.permute.xlu0 %581 }
 0x33f   :  { %v584_v7 = vmul.f32 %v582_v13, %v471_v10  ;;  %v585_v29 = vmul.f32 %v582_v13, %v473_v48  ;;  %v586_v14 = vmul.f32 %v582_v13, %v542_v56  ;;  %v587_v8 = vmul.f32 %v582_v13, %v544_v47 }
 0x342   :  { %v591_v18 = vpop.permute.xlu1 %590 }
 0x343   :  { %v593_v27 = vadd.f32 %v591_v18, %v584_v7  ;;  %v594_v17 = vadd.f32 %v591_v18, %v585_v29  ;;  %v595_v1 = vadd.f32 %v591_v18, %v586_v14  ;;  %v596_v25 = vadd.f32 %v591_v18, %v587_v8 }
 0x345   :  { %v1747_v32 = vmax.f32 %v593_v27, 0.0  ;;  %v1749_v44 = vmax.f32 %v594_v17, 0.0  ;;  %v1751_v39 = vmax.f32 %v595_v1, 0.0  ;;  %v1753_v45 = vmax.f32 %v596_v25, 0.0 }
 0x347   :  { %602 = vrot.lane.b32.xlu1 %v1753_v45, %s1298_s3  ;;  %626 = vrot.lane.b32.xlu0 %v1751_v39, %s1299_s16  ;;  %v1175_v10 = vpack.i.bf16 %v1749_v44, %v1747_v32  ;;  %v1180_v48 = vpack.i.bf16 %v1751_v39, %v1749_v44 }
 0x34b   :  { %1176 = vrot.lane.b32.xlu0 %v1175_v10, %s1300_s17  ;;  %608 = vrot.lane.b32.xlu1 %v1747_v32, %s1298_s3 }
 0x34f   :  { %610 = vrot.lane.b32.xlu1 %v1749_v44, %s1298_s3 }
 0x353   :  { %612 = vrot.lane.b32.xlu1 %v1751_v39, %s1298_s3 }
 0x357   :  { %622 = vrot.lane.b32.xlu1 %v1747_v32, %s1299_s16 }
 0x35b   :  { %624 = vrot.lane.b32.xlu1 %v1749_v44, %s1299_s16 }
 0x35f   :  { %628 = vrot.lane.b32.xlu1 %v1753_v45, %s1299_s16 }
 0x363   :  { %1181 = vrot.lane.b32.xlu1 %v1180_v48, %s1301_s18 }
 0x3b9   :  { %v603_v46 = vpop.permute.xlu1 %602  ;;  %v627_v22 = vpop.permute.xlu0 %626 }
 0x3bd   :  { %v609_v49 = vpop.permute.xlu1 %608 }
 0x3be   :  { %v621_v47 = vsel %vm2078_vm9, %v603_v46, %v609_v49  ;;  %vm2084_vm9 = vmmov %vm2081_vm5 }
 0x3c1   :  { %v611_v50 = vpop.permute.xlu1 %610 }
 0x3c2   :  { %v614_v37 = vsel %vm2079_vm1, %v609_v49, %v611_v50  ;;  %vm2085_vm1 = vmmov %vm2081_vm5 }
 0x3c5   :  { %v613_v56 = vpop.permute.xlu1 %612 }
 0x3c6   :  { %v615_v0 = vsel %vm2082_vm14, %v611_v50, %v613_v56  ;;  %v616_v53 = vsel %vm2083_vm8, %v613_v56, %v603_v46  ;;  %vm2091_vm14 = vcmask 1039360   ;;  %vm2092_vm8 = vcmask 7168  }
 0x3c9   :  { %v623_v41 = vpop.permute.xlu1 %622 }
 0x3cd   :  { %v625_v9 = vpop.permute.xlu1 %624 }
 0x3ce   :  { %v630_v34 = vsel %vm2080_vm13, %v623_v41, %v625_v9  ;;  %v631_v6 = vsel %vm2081_vm5, %v625_v9, %v627_v22  ;;  %vm2089_vm13 = vnez %v2029_v60  ;;  %vm2090_vm5 = vnez %v2027_v59  ;;  %v1177_v60 = vpop.permute.xlu0 %1176 }
 0x3cf   :  { %v1783_v12 = vsel %vm1407_vm2, %v630_v34, %v621_v47  ;;  %v1787_v58 = vsel %vm1420_vm4, %v631_v6, %v614_v37  ;;  %vm2086_vm2 = vnez %v2019_v31  ;;  %vm2087_vm4 = vnez %v2023_v51 }
 0x3d0   :  { %v1190_v11 = vpack.i.bf16 %v1787_v58, %v1747_v32  ;;  %v1185_v52 = vpack.i.bf16 %v1783_v12, %v1753_v45  ;;  %v1821_v31 = vsel %vm2087_vm4, %v621_v47, %v630_v34  ;;  %v1179_v2 = vunpack.i.h.bf16 %v1177_v60 }
 0x3d1   :  { %v629_v43 = vpop.permute.xlu1 %628  ;;  %v1178_v59 = vunpack.i.l.bf16 %v1177_v60  ;;  %v781_v8 = vrot.slane %v1783_v12, 4  ;;  %v782_v18 = vrot.slane %v1787_v58, 4 }
 0x3d2   :  { %v632_v54 = vsel %vm2084_vm9, %v627_v22, %v629_v43  ;;  %v638_v20 = vsel %vm2085_vm1, %v629_v43, %v623_v41  ;;  %1191 = vrot.lane.b32.xlu1 %v1190_v11, %s1301_s18  ;;  %1186 = vrot.lane.b32.xlu0 %v1185_v52, %s1300_s17  ;;  %vm2093_vm9 = vmmov %vm2092_vm8 }
 0x3d3   :  { %v1801_v30 = vsel %vm1431_vm7, %v632_v54, %v615_v0  ;;  %v1805_v63 = vsel %vm2086_vm2, %v638_v20, %v616_v53  ;;  %vm2088_vm7 = vnez %v2025_v55  ;;  %v1833_v57 = vsel %vm2089_vm13, %v615_v0, %v632_v54  ;;  %vm2094_vm1 = vmmov %vm2091_vm14 }
 0x3d4   :  { %v1195_v19 = vpack.i.bf16 %v1805_v63, %v1787_v58  ;;  %v1200_v26 = vpack.i.bf16 %v1783_v12, %v1801_v30  ;;  %v1205_v33 = vpack.i.bf16 %v1801_v30, %v1751_v39  ;;  %v1210_v35 = vpack.i.bf16 %v1805_v63, %v1753_v45  ;;  %vm2095_vm2 = vmmov %vm2092_vm8 }
 0x3d5   :  { %v1825_v40 = vsel %vm2088_vm7, %v614_v37, %v631_v6  ;;  %v1841_v51 = vsel %vm2090_vm5, %v616_v53, %v638_v20  ;;  %v1182_v55 = vpop.permute.xlu1 %1181  ;;  %v698_v14 = vsel %vm2092_vm8, %v1178_v59, %v1179_v2  ;;  %v783_v47 = vrot.slane %v1801_v30, 4  ;;  %vm2096_vm4 = vmmov %vm2095_vm2 }
 0x3d6   :  { %1196 = vrot.lane.b32.xlu0 %v1195_v19, %s1300_s17  ;;  %1201 = vrot.lane.b32.xlu1 %v1200_v26, %s1301_s18  ;;  %v1184_v38 = vunpack.i.h.bf16 %v1182_v55  ;;  %v1183_v42 = vunpack.i.l.bf16 %v1182_v55  ;;  %v814_v1 = vrot.slane %v1825_v40, 4  ;;  %v784_v37 = vrot.slane %v1805_v63, 4  ;;  %vm2097_vm7 = vmmov %vm2094_vm1 }
 0x3d7   :  { %vm2098_vm13 = vmmov %vm2094_vm1  ;;  %vm2099_vm5 = vnez %v2037_v36 }
 0x3d8   :  { %v715_v13 = vsel %vm2091_vm14, %v1183_v42, %v1184_v38  ;;  %vm2100_vm14 = vmmov %vm2095_vm2 }
 0x3d9   :  { %v724_v27 = vsel %vm1551_vm6, %v715_v13, %v698_v14  ;;  %v728_v17 = vsel %vm1547_vm0, %v698_v14, %v715_v13  ;;  %vm2101_vm8 = vmmov %vm2095_vm2 }
 0x3da   :  { %1206 = vrot.lane.b32.xlu0 %v1205_v33, %s1300_s17  ;;  %1211 = vrot.lane.b32.xlu1 %v1210_v35, %s1301_s18  ;;  %v794_v34 = vrot.slane %v724_v27, 4  ;;  %v806_v12 = vrot.slane %v728_v17, 4 }
 0x3de   :  { %742 = vrot.lane.b32.xlu0 %v1821_v31, %s1300_s17  ;;  %744 = vrot.lane.b32.xlu1 %v1825_v40, %s1300_s17 }
 0x3e2   :  { %758 = vrot.lane.b32.xlu0 %v1825_v40, %s1301_s18  ;;  %760 = vrot.lane.b32.xlu1 %v1833_v57, %s1301_s18 }
 0x3e6   :  { %736 = vrot.lane.b32.xlu0 %v1841_v51, %s1300_s17  ;;  %756 = vrot.lane.b32.xlu1 %v1821_v31, %s1301_s18 }
 0x3ea   :  { %746 = vrot.lane.b32.xlu0 %v1833_v57, %s1300_s17  ;;  %762 = vrot.lane.b32.xlu1 %v1841_v51, %s1301_s18 }
 0x444   :  { %v1187_v61 = vpop.permute.xlu0 %1186  ;;  %v1192_v62 = vpop.permute.xlu1 %1191 }
 0x445   :  { %v1188_v7 = vunpack.i.l.bf16 %v1187_v61  ;;  %v1193_v29 = vunpack.i.l.bf16 %v1192_v62  ;;  %v1189_v48 = vunpack.i.h.bf16 %v1187_v61  ;;  %v1194_v46 = vunpack.i.h.bf16 %v1192_v62 }
 0x447   :  { %v705_v56 = vsel %vm2093_vm9, %v1188_v7, %v1178_v59  ;;  %v714_v41 = vsel %vm2094_vm1, %v1193_v29, %v1183_v42  ;;  %vm2102_vm9 = vmmov %vm2095_vm2 }
 0x448   :  { %v1197_v25 = vpop.permute.xlu0 %1196  ;;  %v1202_v10 = vpop.permute.xlu1 %1201  ;;  %v723_v53 = vsel %vm2099_vm5, %v714_v41, %v705_v56  ;;  %v727_v54 = vsel %vm1568_vm12, %v705_v56, %v714_v41 }
 0x449   :  { %v1199_v49 = vunpack.i.h.bf16 %v1197_v25  ;;  %v1198_v50 = vunpack.i.l.bf16 %v1197_v25  ;;  %v1204_v22 = vunpack.i.h.bf16 %v1202_v10  ;;  %v1203_v9 = vunpack.i.l.bf16 %v1202_v10 }
 0x44a   :  { %v793_v10 = vrot.slane %v723_v53, 4 }
 0x44b   :  { %v663_v6 = vsel %vm2095_vm2, %v1199_v49, %v1189_v48  ;;  %v656_v58 = vsel %vm2096_vm4, %v1189_v48, %v1198_v50  ;;  %v672_v11 = vsel %vm2097_vm7, %v1204_v22, %v1194_v46  ;;  %v673_v52 = vsel %vm2098_vm13, %v1194_v46, %v1203_v9  ;;  %vm2103_vm2 = vmmov %vm2094_vm1 }
 0x44c   :  { %v1207_v0 = vpop.permute.xlu0 %1206  ;;  %v1212_v43 = vpop.permute.xlu1 %1211  ;;  %v681_v63 = vsel %vm2099_vm5, %v672_v11, %v663_v6  ;;  %v685_v19 = vsel %vm1568_vm12, %v663_v6, %v672_v11  ;;  %v682_v60 = vsel %vm1551_vm6, %v673_v52, %v656_v58  ;;  %v686_v42 = vsel %vm1547_vm0, %v656_v58, %v673_v52  ;;  %vm2104_vm4 = vmmov %vm2094_vm1 }
 0x44d   :  { %v1209_v20 = vunpack.i.h.bf16 %v1207_v0  ;;  %v1208_v30 = vunpack.i.l.bf16 %v1207_v0  ;;  %v1214_v26 = vunpack.i.h.bf16 %v1212_v43  ;;  %v1213_v33 = vunpack.i.l.bf16 %v1212_v43  ;;  %vm2105_vm7 = vmmov %vm2101_vm8 }
 0x44e   :  { %vm2106_vm13 = vmmov %vm2094_vm1  ;;  %v805_v48 = vrot.slane %v727_v54, 4 }
 0x44f   :  { %v699_v35 = vsel %vm2100_vm14, %v1179_v2, %v1208_v30  ;;  %v700_v55 = vsel %vm2101_vm8, %v1208_v30, %v1188_v7  ;;  %v657_v59 = vsel %vm2102_vm9, %v1198_v50, %v1209_v20  ;;  %v674_v61 = vsel %vm2094_vm1, %v1203_v9, %v1214_v26  ;;  %vm2109_vm9 = vmmov %vm2105_vm7 }
 0x450   :  { %v716_v62 = vsel %vm2103_vm2, %v1184_v38, %v1213_v33  ;;  %v722_v13 = vsel %vm2104_vm4, %v1213_v33, %v1193_v29  ;;  %v743_v14 = vpop.permute.xlu0 %742  ;;  %v745_v27 = vpop.permute.xlu1 %744  ;;  %v658_v2 = vsel %vm2105_vm7, %v1209_v20, %v1199_v49  ;;  %v680_v7 = vsel %vm2106_vm13, %v1214_v26, %v1204_v22 }
 0x451   :  { %v725_v17 = vsel %vm1636_vm10, %v716_v62, %v699_v35  ;;  %vm2107_vm14 = vnez %v2041_v5  ;;  %vm2108_vm8 = vcmask 1043456   ;;  %v683_v29 = vsel %vm1636_vm10, %v674_v61, %v657_v59  ;;  %v63_v5 = vld [vmem:[#allocation2 + $0x4] sm:$0xf] }
 0x452   :  { %v726_v25 = vsel %vm2107_vm14, %v722_v13, %v700_v55  ;;  %v830_v38 = vsel %vm2108_vm8, %v1749_v44, %v806_v12  ;;  %v795_v50 = vrot.slane %v725_v17, 4  ;;  %v748_v49 = vsel %vm2109_vm9, %v743_v14, %v745_v27  ;;  %vm2110_vm1 = vmmov %vm2108_vm8 }
 0x453   :  { %v796_v46 = vrot.slane %v726_v25, 4  ;;  %v822_v56 = vsel %vm2110_vm1, %v682_v60, %v782_v18  ;;  %vm2111_vm2 = vmmov %vm2110_vm1  ;;  %v684_v11 = vsel %vm2107_vm14, %v680_v7, %v658_v2  ;;  %v688_v0 = vsel %vm1646_vm11, %v658_v2, %v680_v7 }
 0x454   :  { %v826_v41 = vsel %vm2111_vm2, %v686_v42, %v794_v34  ;;  %vm2112_vm4 = vmmov %vm2110_vm1  ;;  %v759_v6 = vpop.permute.xlu0 %758  ;;  %v761_v58 = vpop.permute.xlu1 %760  ;;  %v687_v18 = vsel %vm1610_vm3, %v657_v59, %v674_v61  ;;  %v823_v54 = vsel %vm2110_vm1, %v683_v29, %v783_v47  ;;  %v730_v15 = vsel %vm1646_vm11, %v700_v55, %v722_v13 }
 0x455   :  { %v821_v22 = vsel %vm2112_vm4, %v681_v63, %v781_v8  ;;  %vm2113_vm7 = vmmov %vm2110_vm1  ;;  %v1106_v44 = vpack.c.bf16 %v826_v41, %v822_v56  ;;  %v765_v52 = vsel %vm2106_vm13, %v759_v6, %v761_v58  ;;  %v729_v63 = vsel %vm1610_vm3, %v699_v35, %v716_v62 }
 0x456   :  { %v825_v9 = vsel %vm2113_vm7, %v685_v19, %v793_v10  ;;  %v774_v8 = vsel %vm1551_vm6, %v765_v52, %v748_v49  ;;  %vm2114_vm8 = vmmov %vm2110_vm1  ;;  %v813_v60 = vrot.slane %v1821_v31, 4  ;;  %vm2118_vm6 = vcmask 7168  }
 0x457   :  { %v1108_v12 = vpack.c.bf16 %v825_v9, %v821_v22  ;;  %v824_v34 = vsel %vm2114_vm8, %v684_v11, %v784_v37  ;;  %vm2115_vm9 = vmmov %vm2110_vm1  ;;  %1107 = vmatprep.subr.bf16.mxu0 %v1106_v44  ;;  %v807_v35 = vrot.slane %v729_v63, 4  ;;  %v808_v42 = vrot.slane %v730_v15, 4 }
 0x458   :  { %v828_v43 = vsel %vm2115_vm9, %v688_v0, %v796_v46  ;;  %vm2116_vm2 = vmmov %vm2110_vm1  ;;  %v737_v19 = vpop.permute.xlu0 %736  ;;  %v757_v26 = vpop.permute.xlu1 %756  ;;  %v815_v61 = vrot.slane %v1833_v57, 4  ;;  %v816_v31 = vrot.slane %v1841_v51, 4  ;;  %v778_v57 = vsel %vm1547_vm0, %v748_v49, %v765_v52 }
 0x459   :  { %v1114_v53 = vpack.c.bf16 %v828_v43, %v824_v34  ;;  %v827_v20 = vsel %vm2116_vm2, %v687_v18, %v795_v50  ;;  %vm2117_vm4 = vmmov %vm2110_vm1  ;;  %1109 = vmatpush1.bf16.msra.mxu0 %v1108_v12  ;;  %v755_v47 = vsel %vm2118_vm6, %v737_v19, %v743_v14 }
 0x45a   :  { %v834_v30 = vsel %vm2117_vm4, %v774_v8, %v814_v1  ;;  %v1116_v37 = vpack.c.bf16 %v827_v20, %v823_v54  ;;  %vm2119_vm7 = vmmov %vm2106_vm13  ;;  %v831_v51 = vsel %vm2117_vm4, %v1751_v39, %v807_v35 }
 0x45b   :  { %v1110_v33 = vpack.c.bf16 %v834_v30, %v830_v38  ;;  %1115 = vmatprep.subr.bf16.mxu1 %v1114_v53  ;;  %v764_v40 = vsel %vm2119_vm7, %v757_v26, %v759_v6  ;;  %vm2120_vm13 = vmmov %vm2110_vm1 }
 0x45c   :  { %1117 = vmatpush1.bf16.msra.mxu1 %v1116_v37  ;;  %v773_v1 = vsel %vm2099_vm5, %v764_v40, %v755_v47  ;;  %v829_v55 = vsel %vm2120_vm13, %v1747_v32, %v805_v48  ;;  %vm2121_vm8 = vmmov %vm2110_vm1  ;;  %v747_v13 = vpop.permute.xlu0 %746  ;;  %v763_v14 = vpop.permute.xlu1 %762  ;;  %v777_v38 = vsel %vm1568_vm12, %v755_v47, %v764_v40  ;;  %v67_v47 = vld [vmem:[%s1995_s2 + $0xc] sm:$0xf] }
 0x45d   :  { %1111 = vmatprep.subr.bf16.mxu0 %v1110_v33  ;;  %v833_v59 = vsel %vm2121_vm8, %v773_v1, %v813_v60  ;;  %vm2122_vm9 = vmmov %vm2118_vm6 }
 0x45e   :  { %v1112_v62 = vpack.c.bf16 %v833_v59, %v829_v55  ;;  %v749_v2 = vsel %vm2122_vm9, %v745_v27, %v747_v13  ;;  %vm2123_vm1 = vmmov %vm2118_vm6 }
 0x45f   :  { %v750_v36 = vsel %vm2123_vm1, %v747_v13, %v737_v19  ;;  %vm2124_vm5 = vmmov %vm2119_vm7 }
 0x460   :  { %v766_v7 = vsel %vm2124_vm5, %v761_v58, %v763_v14  ;;  %vm2125_vm2 = vmmov %vm2124_vm5  ;;  %1113 = vmatpush1.bf16.msra.mxu0 %v1112_v62 }
 0x461   :  { %v772_v17 = vsel %vm2125_vm2, %v763_v14, %v757_v26  ;;  %v775_v32 = vsel %vm1636_vm10, %v766_v7, %v749_v2  ;;  %vm2126_vm6 = vmmov %vm2117_vm4  ;;  %v779_v39 = vsel %vm1610_vm3, %v749_v2, %v766_v7  ;;  %v66_v26 = vld [vmem:[%s1995_s2 + $0x8] sm:$0xf] }
 0x462   :  { %v776_v25 = vsel %vm2107_vm14, %v772_v17, %v750_v36  ;;  %v835_v27 = vsel %vm2126_vm6, %v775_v32, %v815_v61  ;;  %vm2127_vm7 = vmmov %vm2117_vm4  ;;  %v780_v24 = vsel %vm1646_vm11, %v750_v36, %v772_v17  ;;  %v1221_v36 = vld [vmem:[%s1993_s0] sm:$0xff]  ;;  %v1222_v32 = vld [vmem:[%s1993_s0 + $0x8] sm:$0xff] }
 0x463   :  { %1084 = vmatprep.subr.msk.mxu0 %vm2127_vm7, %v778_v57  ;;  %vm2128_vm13 = vmmov %vm2117_vm4  ;;  %v1120_v48 = vpack.c.bf16 %v835_v27, %v831_v51 }
 0x464   :  { %v832_v10 = vsel %vm2128_vm13, %v1753_v45, %v808_v42  ;;  %vm2129_vm8 = vmmov %vm2117_vm4 }
 0x465   :  { %v836_v21 = vsel %vm2129_vm8, %v776_v25, %v816_v31  ;;  %vm2130_vm10 = vmmov %vm2117_vm4 }
 0x466   :  { %v1118_v46 = vpack.c.bf16 %v836_v21, %v832_v10  ;;  %1085 = vmatpush1.msk.msra.mxu0 %vm2130_vm10, %v777_v38  ;;  %vm2131_vm0 = vmmov %vm2117_vm4 }
 0x467   :  { %1086 = vmatmul.mubr.msk.f32.vlgmr.msra.gmra.mrb[2].mxu0 %vm389_vm15, %v63_v5  ;;  %vm2132_vm14 = vmmov %vm2131_vm0 }
 0x468   :  { %1119 = vmatprep.subr.bf16.mxu1 %v1118_v46  ;;  %vm2133_vm12 = vmmov %vm2131_vm0 }
 0x469   :  { %1121 = vmatpush1.bf16.msra.mxu1 %v1120_v48  ;;  %vm2134_vm9 = vmmov %vm2131_vm0 }
 0x46a   :  { %1087 = vmatprep.subr.msk.mxu1 %vm2131_vm0, %v780_v24  ;;  %vm2135_vm1 = vmmov %vm2131_vm0 }
 0x46b   :  { %vm2136_vm11 = vmmov %vm2131_vm0 }
 0x46c   :  { %vm2137_vm3 = vmmov %vm2131_vm0 }
 0x46d   :  { %1088 = vmatpush1.msk.msra.mxu1 %vm2132_vm14, %v779_v39  ;;  %vm2139_vm5 = vmmov %vm2131_vm0 }
 0x46e   :  { %1089 = vmatmul.mubr.msk.f32.vlgmr.msra.gmra.mrb[2].mxu1 %vm389_vm15, %v63_v5  ;;  %vm2138_vm15 = vmmov %vm2131_vm0 }
 0x46f   :  { %vm2140_vm2 = vmmov %vm2131_vm0 }
 0x53a   :  { %v918_v28 = vpop.f32.mrb[2].mxu0 }
 0x53b   :  { %v994_v45 = vsel %vm2133_vm12, %v918_v28, 0.0  ;;  %v1003_v29 = vmul.f32 %v918_v28, %v918_v28  ;;  %v920_v50 = vpop.f32.mrb[3].mxu0 }
 0x53c   :  { %v995_v49 = vsel %vm2134_vm9, %v920_v50, 0.0  ;;  %v1004_v56 = vmul.f32 %v920_v50, %v920_v50 }
 0x53d   :  { %v1007_v23 = vsel %vm2135_vm1, %v1003_v29, 0.0  ;;  %v996_v41 = vadd.f32 %v995_v49, %v994_v45 }
 0x53e   :  { %v1008_v22 = vsel %vm2136_vm11, %v1004_v56, 0.0 }
 0x53f   :  { %v1009_v9 = vadd.f32 %v1008_v22, %v1007_v23 }
 0x541   :  { %v989_v16 = vpop.f32.mrb[2].mxu1 }
 0x542   :  { %v997_v6 = vsel %vm2137_vm3, %v989_v16, 0.0  ;;  %v1005_v58 = vmul.f32 %v989_v16, %v989_v16  ;;  %v991_v11 = vpop.f32.mrb[3].mxu1 }
 0x543   :  { %v999_v44 = vsel %vm2138_vm15, %v991_v11, 0.0  ;;  %v1006_v12 = vmul.f32 %v991_v11, %v991_v11  ;;  %v998_v52 = vadd.f32 %v997_v6, %v996_v41 }
 0x544   :  { %v1010_v0 = vsel %vm2139_vm5, %v1005_v58, 0.0 }
 0x545   :  { %v1000_v18 = vadd.f32 %v999_v44, %v998_v52  ;;  %v1011_v8 = vadd.f32 %v1010_v0, %v1009_v9  ;;  %v1012_v34 = vsel %vm2140_vm2, %v1006_v12, 0.0 }
 0x547   :  { %1001 = vadd.xlane.f32.xlu0 %v1000_v18  ;;  %v1013_v43 = vadd.f32 %v1012_v34, %v1011_v8 }
 0x549   :  { %1014 = vadd.xlane.f32.xlu1 %v1013_v43 }
 0x5d4   :  { %v1002_v53 = vpop.xlane.xlu0 %1001 }
 0x5d5   :  { %v1016_v54 = vmul.f32 0.001953125, %v1002_v53 }
 0x5d6   :  { %v1015_v20 = vpop.xlane.xlu1 %1014 }
 0x5d7   :  { %v1018_v30 = vmul.f32 %v1016_v54, %v1016_v54  ;;  %v1017_v63 = vmul.f32 0.001953125, %v1015_v20 }
 0x5d9   :  { %v1019_v15 = vsub.f32 %v1017_v63, %v1018_v30 }
 0x5db   :  { %v1020_v37 = vmax.f32 %v1019_v15, 0.0 }
 0x5dd   :  { %v1021_v19 = vadd.f32 1e-05, %v1020_v37 }
 0x5df   :  { %1219 = vrsqrt.f32 %v1021_v19 }
 0x5e9   :  { %v1220_v33 = vpop.eup %1219 }
 0x5ea   :  { %v1023_v60 = vmul.f32 %v1220_v33, %v66_v26 }
 0x5ec   :  { %1028 = vperm.xlu0 %1173, %v1023_v60   ;;  %v1024_v40 = vmul.f32 %v1023_v60, %v1016_v54 }
 0x5ee   :  { %v1025_v1 = vsub.f32 %v67_v47, %v1024_v40 }
 0x5f0   :  { %1037 = vperm.xlu1 %1174, %v1025_v1  }
 0x66b   :  { %v1029_v35 = vpop.permute.xlu0 %1028 }
 0x66c   :  { %v1031_v42 = vmul.f32 %v1029_v35, %v918_v28  ;;  %v1032_v55 = vmul.f32 %v1029_v35, %v920_v50  ;;  %v1033_v59 = vmul.f32 %v1029_v35, %v989_v16  ;;  %v1034_v61 = vmul.f32 %v1029_v35, %v991_v11 }
 0x66f   :  { %v1038_v31 = vpop.permute.xlu1 %1037 }
 0x670   :  { %v1040_v62 = vadd.f32 %v1038_v31, %v1031_v42  ;;  %v1041_v13 = vadd.f32 %v1038_v31, %v1032_v55  ;;  %v1042_v14 = vadd.f32 %v1038_v31, %v1033_v59  ;;  %v1043_v2 = vadd.f32 %v1038_v31, %v1034_v61 }
 0x672   :  { %v1044_v7 = vadd.f32 %v1221_v36, %v1040_v62  ;;  %v1045_v17 = vadd.f32 %v1041_v13, %v1373_v3  ;;  %v1046_v25 = vadd.f32 %v1222_v32, %v1042_v14  ;;  %v1047_v57 = vadd.f32 %v1043_v2, %v1381_v4 }
 0x674   :  { %v1050_v51 = vcombine.low %v1044_v7, %v1045_v17  ;;  %v1055_v27 = vcombine.low %v1046_v25, %v1047_v57 }
 0x676   :  { %1052 = vst [vmem:[#allocation7] sm:$0xff] %v1050_v51  ;;  %1058 = vst [vmem:[#allocation7 + $0x8] sm:$0xff] %v1055_v27 }
 0x677   :  { %1278 = shalt.err (!%p1275_p6)
}
 0x678   :  { %s1279_s9 = scalar_lea.hbm %s1997_s4, 256 }
 0x679   :  { %p1280_p7 = scmp.ne.s32.totalorder %s1997_s4, %s1279_s9  ;;  %p1283_p8 = scmp.lt.u32.totalorder %s1279_s9, %s1997_s4 }
 0x67b   :  { %p1285_p9 = pnand %p1283_p8, %p1280_p7 }
 0x67d   :  { %1288 = shalt.err (!%p1285_p9)
}
 0x67e   :  { %s1304_s12 = smov 128   ;;  %s1305_s13 = smov 8  }
 0x67f   :  { %1070 = dma.vmem_to_hbm [thread:$0]  %s1065_s28, 256, %s1997_s4, [#allocation4], %s1304_s12, %s1304_s12, %s1305_s13  }
 0x680   :  { %1293 = dma.done.wait [#allocation4], 256  }
 0x681   :  { %1294 = vsyncadd [#allocation4], 4294967040 }
 0x682   :  { %1074 = vsyncpa [#allocation3], 1 }
 0x683   :  { %1075 = vsyncpa [#allocation6], 1 }
 0x684   :  { %1076 = vsyncpa [#allocation4], 1 }

</bundles_post_ra>
